<compile_context>
chip_gen: v7x
topology: tpu7x:2x2x1
jax: 0.10.0
libtpu: 0.0.40
codegen_flags: <defaults>
</compile_context>

<pallas_src>
import functools
import math

import numpy as np
import jax
import jax.numpy as jnp
from jax.experimental import pallas as pl
from jax.experimental.pallas import tpu as pltpu

_MM_DTYPE = jnp.bfloat16   # MXU operand dtype (accumulation stays f32)


# ----------------------------- Pallas kernels ------------------------------

def _attn_layer_kernel(x_ref, g_ref, wqkv_ref, bqkv_ref,
                       cosq_ref, sinq_ref, cosk_ref, sink_ref,
                       wo_ref, bo_ref, o_ref, *, q_heads, kv_heads, head_dim):
    """Fused RMSNorm -> QKV -> RoPE -> head-batched causal GQA attention ->
    out-proj -> residual add.  One grid step == one batch element."""
    x = x_ref[0]                                     # (S, D) f32
    S, D = x.shape
    Dq = q_heads * head_dim
    Dk = kv_heads * head_dim
    hd2 = head_dim // 2
    rep = q_heads // kv_heads

    # RMSNorm (eps = 1e-5, learnable gain) in f32.
    ms = jnp.mean(x * x, axis=-1, keepdims=True)
    xh = g_ref[...] * x * jax.lax.rsqrt(ms + 1e-5)

    # Fused QKV projection: bf16 operands, f32 accumulation.  wq already
    # carries the 1/sqrt(head_dim) score scale and the RoPE split-halves
    # column permutation; wk carries the permutation; wv is untouched.
    qkv = jnp.dot(xh.astype(_MM_DTYPE), wqkv_ref[...],
                  preferred_element_type=jnp.float32) + bqkv_ref[...]
    q = qkv[:, :Dq]
    k = qkv[:, Dq:Dq + Dk]
    v = qkv[:, Dq + Dk:]

    # RoPE as pure elementwise f32 math on the split-halves layout.
    qr, qi = q[:, :Dq // 2], q[:, Dq // 2:]
    cq, sq = cosq_ref[...], sinq_ref[...]
    qr, qi = qr * cq - qi * sq, qr * sq + qi * cq
    kr, ki = k[:, :Dk // 2], k[:, Dk // 2:]
    ck, sk = cosk_ref[...], sink_ref[...]
    kr, ki = kr * ck - ki * sk, kr * sk + ki * ck

    # Regroup to head-major layouts for head-batched MXU matmuls.  Per-head
    # columns become [real halves | imag halves]; the same permutation is used
    # for Q and K so the dot product over head_dim is unchanged.
    def to_heads(re, im, n_heads):
        r3 = jnp.transpose(re.reshape(S, n_heads, hd2), (1, 0, 2))
        i3 = jnp.transpose(im.reshape(S, n_heads, hd2), (1, 0, 2))
        return jnp.concatenate([r3, i3], axis=-1).astype(_MM_DTYPE)

    # q grouped by shared KV head: (kv_heads, rep*S, head_dim); GQA without
    # any jnp.repeat of K/V.
    q_g = to_heads(qr, qi, q_heads).reshape(kv_heads, rep * S, head_dim)
    k_g = to_heads(kr, ki, kv_heads)                               # (G, S, hd)
    v_g = jnp.transpose(v.reshape(S, kv_heads, head_dim),
                        (1, 0, 2)).astype(_MM_DTYPE)               # (G, S, hd)

    # Scores for all heads in one batched matmul (contraction depth head_dim).
    s = jnp.einsum('gqc,gkc->gqk', q_g, k_g,
                   preferred_element_type=jnp.float32)             # (G, rep*S, S)

    # Causal mask (startpos == 0 prefill).  Query row (r*S + t) has position t.
    row = jnp.tile(jax.lax.broadcasted_iota(jnp.int32, (S, S), 0), (rep, 1))
    col = jax.lax.broadcasted_iota(jnp.int32, (rep * S, S), 1)
    s = jnp.where((col <= row)[None], s, -1e30)

    # Softmax in f32: explicit max-sub / exp / EUP reciprocal.
    m = jnp.max(s, axis=-1, keepdims=True)
    e = jnp.exp(s - m)
    p = e * pl.reciprocal(jnp.sum(e, axis=-1, keepdims=True), approx=True)

    # P @ V, batched over KV-head groups.
    pv = jnp.einsum('gqk,gkc->gqc', p.astype(_MM_DTYPE), v_g,
                    preferred_element_type=jnp.float32)            # (G, rep*S, hd)

    # Fold every head's output through its slice of wo (kept head-major) and
    # sum over heads — avoids a lane-concat transpose back to (S, D).
    out_h = pv.reshape(q_heads, S, head_dim).astype(_MM_DTYPE)
    ao = jnp.einsum('hsc,hcd->hsd', out_h, wo_ref[...],
                    preferred_element_type=jnp.float32)            # (H, S, D)
    attn = jnp.sum(ao, axis=0)                                     # (S, D)

    o_ref[0] = (x + attn + bo_ref[...]).astype(o_ref.dtype)
    # TODO(synk): for long sequences, switch to a flash-style online softmax
    # with a KV grid axis (bounds the (S, S) score tile in VMEM).


def _moe_layer_kernel(x_ref, g_ref, gw_ref, w12_ref, b12_ref, w3_ref, b3_ref,
                      o_ref, xh_sc, gates_sc, acc_sc,
                      *, num_experts, topk, hidden):
    """Fused RMSNorm -> gate -> dense top-k softmax gates -> SwiGLU experts.
    Grid = (row tiles, experts); expert weights are streamed over axis 1 and
    the weighted expert outputs accumulate into a VMEM scratch."""
    e = pl.program_id(1)
    x = x_ref[...]                                   # (tm, D) f32

    @pl.when(e == 0)
    def _():
        ms = jnp.mean(x * x, axis=-1, keepdims=True)
        xh = g_ref[...] * x * jax.lax.rsqrt(ms + 1e-5)
        xh_sc[...] = xh.astype(_MM_DTYPE)
        logits = jnp.dot(xh.astype(_MM_DTYPE), gw_ref[...],
                         preferred_element_type=jnp.float32)       # (tm, E)
        # Dense top-k gating: equivalent to torch.topk + softmax over the
        # selected values for distinct logits (ties are measure-zero).
        masked = logits
        m1 = kth = None
        for i in range(topk):                        # static tiny loop
            kth = jnp.max(masked, axis=-1, keepdims=True)
            if i == 0:
                m1 = kth
            masked = jnp.where(masked >= kth, -1e30, masked)
        keep = logits >= kth
        ew = jnp.where(keep, jnp.exp(logits - m1), 0.0)
        gates_sc[...] = ew * pl.reciprocal(
            jnp.sum(ew, axis=-1, keepdims=True), approx=True)      # (tm, E)
        acc_sc[...] = jnp.zeros_like(acc_sc)

    # This grid step's expert (streamed weight block), bf16 MXU operands.
    xh_b = xh_sc[...]                                              # (tm, D) bf16
    h12 = jnp.dot(xh_b, w12_ref[0], preferred_element_type=jnp.float32) + b12_ref[0]
    h1 = h12[:, :hidden]
    h2 = h12[:, hidden:]
    gated = h1 * (h2 * jax.nn.sigmoid(h2))           # mlp1(x) * SiLU(mlp2(x))
    oe = jnp.dot(gated.astype(_MM_DTYPE), w3_ref[0],
                 preferred_element_type=jnp.float32) + b3_ref[0]
    # Select this expert's gate column with a one-hot mask (no dynamic lane
    # indexing into VMEM).
    onehot = jax.lax.broadcasted_iota(jnp.int32, (1, num_experts), 1) == e
    ge = jnp.sum(jnp.where(onehot, gates_sc[...], 0.0), axis=-1, keepdims=True)
    acc_sc[...] += ge * oe

    @pl.when(e == num_experts - 1)
    def _():
        o_ref[...] = (x + acc_sc[...]).astype(o_ref.dtype)
    # TODO(synk): at realistic E / token counts, replace the dense top-2-of-5
    # compute with a token-sorted grouped matmul (PrefetchScalarGridSpec) and
    # consider fp8 (v7x) / int8 (v5e/v6e) expert weights with per-channel
    # scales to halve weight traffic again.


def _rms_kernel(x_ref, g_ref, o_ref):
    x = x_ref[...]
    ms = jnp.mean(x * x, axis=-1, keepdims=True)
    o_ref[...] = (g_ref[...] * x * jax.lax.rsqrt(ms + 1e-5)).astype(o_ref.dtype)


# ------------------------------ call wrappers -------------------------------

def _const_spec(arr):
    """Full-array block revisited at every grid step.  Single-buffered: the
    second pipeline buffer is pure VMEM waste for grid-invariant operands."""
    n = arr.ndim
    imap = lambda *_: (0,) * n
    try:
        return pl.BlockSpec(arr.shape, imap, pipeline_mode=pl.Buffered(1))
    except Exception:       # older jax without pipeline_mode: fall back
        return pl.BlockSpec(arr.shape, imap)


def _row_block(T, max_rows=1024):
    """Prefer one big row tile (per-grid-step overhead ~0.35us dominates tiny
    tiles); otherwise the largest multiple of 8 dividing T that is <= max_rows."""
    if T <= max_rows or T % 8 != 0:
        return T
    tm = max_rows - (max_rows % 8)
    while tm > 8 and T % tm != 0:
        tm -= 8
    return tm


def attention_stage(x, lp, cos_q, sin_q, cos_k, sin_k, q_heads, kv_heads):
    B, S, D = x.shape
    head_dim = D // q_heads
    kernel = functools.partial(_attn_layer_kernel, q_heads=q_heads,
                               kv_heads=kv_heads, head_dim=head_dim)
    xspec = pl.BlockSpec((1, S, D), lambda b: (b, 0, 0))
    return pl.pallas_call(
        kernel,
        out_shape=jax.ShapeDtypeStruct((B, S, D), x.dtype),
        grid=(B,),
        in_specs=[xspec, _const_spec(lp["attn_rms"]), _const_spec(lp["wqkv"]),
                  _const_spec(lp["bqkv"]), _const_spec(cos_q), _const_spec(sin_q),
                  _const_spec(cos_k), _const_spec(sin_k), _const_spec(lp["wo3"]),
                  _const_spec(lp["bo"])],
        out_specs=xspec,
        input_output_aliases={0: 0},                  # residual stream in place
        compiler_params=pltpu.CompilerParams(dimension_semantics=("parallel",)),
    )(x, lp["attn_rms"], lp["wqkv"], lp["bqkv"], cos_q, sin_q, cos_k, sin_k,
      lp["wo3"], lp["bo"])


def moe_stage(x, lp, topk):
    B, S, D = x.shape
    T = B * S
    x2 = x.reshape(T, D)
    E, _, H2 = lp["w12"].shape
    hidden = H2 // 2
    tm = _row_block(T)
    kernel = functools.partial(_moe_layer_kernel, num_experts=E, topk=topk,
                               hidden=hidden)
    xspec = pl.BlockSpec((tm, D), lambda i, e: (i, 0))
    out = pl.pallas_call(
        kernel,
        out_shape=jax.ShapeDtypeStruct((T, D), x.dtype),
        grid=(T // tm, E),
        in_specs=[xspec,
                  _const_spec(lp["expert_rms"]),
                  _const_spec(lp["gate_w"]),
                  # Streamed expert weights: one expert per grid step on the
                  # "arbitrary" axis, default double-buffering overlaps the
                  # next expert's DMA with this expert's matmuls.
                  pl.BlockSpec((1, D, H2), lambda i, e: (e, 0, 0)),
                  pl.BlockSpec((1, 1, H2), lambda i, e: (e, 0, 0)),
                  pl.BlockSpec((1, hidden, D), lambda i, e: (e, 0, 0)),
                  pl.BlockSpec((1, 1, D), lambda i, e: (e, 0, 0))],
        out_specs=pl.BlockSpec((tm, D), lambda i, e: (i, 0)),
        scratch_shapes=[pltpu.VMEM((tm, D), _MM_DTYPE),     # xh (bf16)
                        pltpu.VMEM((tm, E), jnp.float32),   # gates
                        pltpu.VMEM((tm, D), jnp.float32)],  # accumulator
        input_output_aliases={0: 0},                  # residual stream in place
        compiler_params=pltpu.CompilerParams(
            dimension_semantics=("parallel", "arbitrary")),
    )(x2, lp["expert_rms"], lp["gate_w"], lp["w12"], lp["b12"], lp["w3"],
      lp["b3"])
    return out.reshape(B, S, D)


def rms_norm(x2d, g):
    T, D = x2d.shape
    tm = _row_block(T)
    xspec = pl.BlockSpec((tm, D), lambda i: (i, 0))
    return pl.pallas_call(
        _rms_kernel,
        out_shape=jax.ShapeDtypeStruct((T, D), x2d.dtype),
        grid=(T // tm,),
        in_specs=[xspec, _const_spec(g)],
        out_specs=xspec,
        input_output_aliases={0: 0},
        compiler_params=pltpu.CompilerParams(dimension_semantics=("parallel",)),
    )(x2d, g)


def decoder_forward(x, prepared, cos_base, sin_base, q_heads, kv_heads, startpos=0):
    """Full Decoder forward (prefill).  cos/sin tiling is tiny one-time glue
    shared by all layers; everything else runs inside Pallas kernels."""
    # TODO(synk): startpos > 0 / KV-cache decode path not implemented; the
    # startpos == 0 prefill path reproduces the reference semantics.
    B, S, D = x.shape
    cs = cos_base[startpos:startpos + S]             # (S, head_dim // 2)
    ss = sin_base[startpos:startpos + S]
    cos_q = jnp.tile(cs, (1, q_heads))
    sin_q = jnp.tile(ss, (1, q_heads))
    cos_k = jnp.tile(cs, (1, kv_heads))
    sin_k = jnp.tile(ss, (1, kv_heads))
    for lp in prepared["layers"]:
        x = attention_stage(x, lp, cos_q, sin_q, cos_k, sin_k, q_heads, kv_heads)
        x = moe_stage(x, lp, topk=2)
    return rms_norm(x.reshape(B * S, D), prepared["final_rms"]).reshape(B, S, D)


# --------------------------- parameter handling ------------------------------

def precompute_freqs(dim, end, theta=50000.0):
    # theta=50000.0 matches the reference precompute_freqs_cis default.
    freqs = 1.0 / theta ** (jnp.arange(0, dim, 2)[: dim // 2].astype(jnp.float32) / dim)
    t = jnp.arange(end, dtype=jnp.float32)
    f = jnp.outer(t, freqs)
    return jnp.cos(f), jnp.sin(f)            # each (end, dim // 2)


def _split_halves_perm(num_heads, head_dim):
    """Column gather indices mapping the interleaved (re, im, re, im, ...)
    RoPE-pair layout to [all real parts | all imaginary parts] (head-major)."""
    hd2 = head_dim // 2
    real = (np.arange(num_heads)[:, None] * head_dim
            + 2 * np.arange(hd2)[None, :]).reshape(-1)
    return np.concatenate([real, real + 1])


def prepare_params(params, q_heads, kv_heads):
    """One-time weight prep: fuse QKV and w1|w2, permute Q/K columns for
    elementwise RoPE, fold the 1/sqrt(head_dim) score scale into wq/bq,
    reshape wo to head-major 3-D, and cast matmul weights to bf16."""
    layers = []
    for lp in params["layers"]:
        a, m = lp["attn"], lp["moe"]
        D = a["wq"].shape[0]
        head_dim = D // q_heads
        scale = 1.0 / math.sqrt(head_dim)
        pq = _split_halves_perm(q_heads, head_dim)
        pk = _split_halves_perm(kv_heads, head_dim)
        wqkv = jnp.concatenate([a["wq"][:, pq] * scale, a["wk"][:, pk], a["wv"]], axis=1)
        bqkv = jnp.concatenate([a["bq"][:, pq] * scale, a["bk"][:, pk], a["bv"]], axis=1)
        layers.append({
            "attn_rms": lp["attn_rms"].reshape(1, -1),
            "expert_rms": lp["expert_rms"].reshape(1, -1),
            "wqkv": wqkv.astype(_MM_DTYPE),
            "bqkv": bqkv,
            "wo3": a["wo"].reshape(q_heads, head_dim, D).astype(_MM_DTYPE),
            "bo": a["bo"],
            "gate_w": m["gate_w"].astype(_MM_DTYPE),
            "w12": jnp.concatenate([m["w1"], m["w2"]], axis=2).astype(_MM_DTYPE),
            "b12": jnp.concatenate([m["b1"], m["b2"]], axis=2),
            "w3": m["w3"].astype(_MM_DTYPE),
            "b3": m["b3"],
        })
    return {"layers": layers, "final_rms": params["final_rms"].reshape(1, -1)}


def init_params(key, vinput, hidden, q_heads, kv_heads, num_experts, layers_num):
    def nxt():
        nonlocal key
        key, sub = jax.random.split(key)
        return sub

    def lin(din, dout):
        return (jax.random.normal(nxt(), (din, dout), jnp.float32) * 0.05,
                jax.random.normal(nxt(), (1, dout), jnp.float32) * 0.01)

    layers = []
    for _ in range(layers_num):
        wq, bq = lin(vinput, vinput)
        wk, bk = lin(vinput, (vinput // q_heads) * kv_heads)
        wv, bv = lin(vinput, (vinput // q_heads) * kv_heads)
        wo, bo = lin(vinput, vinput)
        w1 = jax.random.normal(nxt(), (num_experts, vinput, hidden), jnp.float32) * 0.05
        b1 = jax.random.normal(nxt(), (num_experts, 1, hidden), jnp.float32) * 0.01
        w2 = jax.random.normal(nxt(), (num_experts, vinput, hidden), jnp.float32) * 0.05
        b2 = jax.random.normal(nxt(), (num_experts, 1, hidden), jnp.float32) * 0.01
        w3 = jax.random.normal(nxt(), (num_experts, hidden, vinput), jnp.float32) * 0.05
        b3 = jax.random.normal(nxt(), (num_experts, 1, vinput), jnp.float32) * 0.01
        gate_w = jax.random.normal(nxt(), (vinput, num_experts), jnp.float32) * 0.05
        layers.append({
            "attn_rms": jax.random.normal(nxt(), (vinput,), jnp.float32),
            "expert_rms": jax.random.normal(nxt(), (vinput,), jnp.float32),
            "attn": {"wq": wq, "bq": bq, "wk": wk, "bk": bk,
                     "wv": wv, "bv": bv, "wo": wo, "bo": bo},
            "moe": {"w1": w1, "b1": b1, "w2": w2, "b2": b2, "w3": w3, "b3": b3,
                    "gate_w": gate_w},
        })
    return {"layers": layers,
            "final_rms": jax.random.normal(nxt(), (vinput,), jnp.float32)}


# ---------------------------------- main ------------------------------------

if __name__ == "__main__":
    # Shapes consistent with the module: vinput=32, hidden=64, q_heads=4,
    # kv_heads=2 (head_size=8), Rope_Length=16, layers_num=2, batch=2, seq=8.
    vinput, hidden = 32, 64
    q_heads, kv_heads = 4, 2
    rope_len, layers_num = 16, 2
    num_experts = 5
    B, S = 2, 8

    key = jax.random.PRNGKey(0)
    key, pkey, xkey = jax.random.split(key, 3)
    raw_params = init_params(pkey, vinput, hidden, q_heads, kv_heads,
                             num_experts=num_experts, layers_num=layers_num)
    prepared = prepare_params(raw_params, q_heads, kv_heads)
    cos_base, sin_base = precompute_freqs(vinput // q_heads, rope_len)

    x = jax.random.normal(xkey, (B, S, vinput), jnp.float32)
    fwd = jax.jit(functools.partial(decoder_forward, q_heads=q_heads,
                                    kv_heads=kv_heads, startpos=0))
    out = fwd(x, prepared, cos_base, sin_base)
    out = jax.block_until_ready(out)
    assert out.shape == (B, S, vinput) and out.dtype == jnp.float32
    assert bool(jnp.all(jnp.isfinite(out)))
    print("KERNEL_OK")
</pallas_src>

<mosaic_0001>
module attributes {stable_mosaic.version = 11 : i64} {
  func.func @_moe_layer_kernel(%arg0: i32, %arg1: i32, %arg2: memref<16x32xf32, #tpu.memory_space<vmem>>, %arg3: memref<1x32xf32, #tpu.memory_space<vmem>>, %arg4: memref<32x5xbf16, #tpu.memory_space<vmem>>, %arg5: memref<1x32x128xbf16, #tpu.memory_space<vmem>>, %arg6: memref<1x1x128xf32, #tpu.memory_space<vmem>>, %arg7: memref<1x64x32xbf16, #tpu.memory_space<vmem>>, %arg8: memref<1x1x32xf32, #tpu.memory_space<vmem>>, %arg9: memref<16x32xf32, #tpu.memory_space<vmem>>, %arg10: memref<16x32xbf16, #tpu.memory_space<vmem>>, %arg11: memref<16x5xf32, #tpu.memory_space<vmem>>, %arg12: memref<16x32xf32, #tpu.memory_space<vmem>>) attributes {dimension_semantics = [#tpu.dimension_semantics<parallel>, #tpu.dimension_semantics<arbitrary>], iteration_bounds = array<i64: 1, 5>, scalar_prefetch = 0 : i64, scratch_operands = 3 : i64, tpu.core_type = #tpu.core_type<tc>, window_params = [{transform_indices = @transform_0, window_bounds = array<i64: 16, 32>}, {pipeline_mode = #tpu.pipeline_mode<synchronous>, transform_indices = @transform_1, window_bounds = array<i64: 1, 32>}, {pipeline_mode = #tpu.pipeline_mode<synchronous>, transform_indices = @transform_2, window_bounds = array<i64: 32, 5>}, {transform_indices = @transform_3, window_bounds = array<i64: 1, 32, 128>}, {transform_indices = @transform_4, window_bounds = array<i64: 1, 1, 128>}, {transform_indices = @transform_5, window_bounds = array<i64: 1, 64, 32>}, {transform_indices = @transform_6, window_bounds = array<i64: 1, 1, 32>}, {transform_indices = @transform_7, window_bounds = array<i64: 16, 32>}]} {
    %c0 = arith.constant 0 : index
    %c0_0 = arith.constant 0 : index
    %0 = vector.load %arg2[%c0, %c0_0] : memref<16x32xf32, #tpu.memory_space<vmem>>, vector<16x32xf32>
    %c0_i32 = arith.constant 0 : i32
    %1 = arith.cmpi eq, %arg1, %c0_i32 : i32
    %2 = arith.extui %1 : i1 to i32
    %c0_i32_1 = arith.constant 0 : i32
    %3 = arith.cmpi ne, %2, %c0_i32_1 : i32
    scf.if %3 {
      %47 = arith.mulf %0, %0 : vector<16x32xf32>
      %cst_27 = arith.constant dense<0.000000e+00> : vector<16xf32>
      %48 = vector.multi_reduction <add>, %47, %cst_27 [1] : vector<16x32xf32> to vector<16xf32>
      %49 = vector.shape_cast %48 : vector<16xf32> to vector<16x1xf32>
      %cst_28 = arith.constant 3.200000e+01 : f32
      %50 = vector.broadcast %cst_28 : f32 to vector<16x1xf32>
      %51 = arith.divf %49, %50 : vector<16x1xf32>
      %c0_29 = arith.constant 0 : index
      %c0_30 = arith.constant 0 : index
      %52 = vector.load %arg3[%c0_29, %c0_30] : memref<1x32xf32, #tpu.memory_space<vmem>>, vector<1x32xf32>
      %53 = vector.broadcast %52 : vector<1x32xf32> to vector<16x32xf32>
      %54 = arith.mulf %53, %0 : vector<16x32xf32>
      %cst_31 = arith.constant 9.99999974E-6 : f32
      %55 = vector.broadcast %cst_31 : f32 to vector<16x1xf32>
      %56 = arith.addf %51, %55 : vector<16x1xf32>
      %57 = math.rsqrt %56 : vector<16x1xf32>
      %58 = vector.broadcast %57 : vector<16x1xf32> to vector<16x32xf32>
      %59 = arith.mulf %54, %58 : vector<16x32xf32>
      %60 = arith.truncf %59 : vector<16x32xf32> to vector<16x32xbf16>
      %c0_32 = arith.constant 0 : index
      %c0_33 = arith.constant 0 : index
      %61 = vector.load %arg10[%c0_32, %c0_33] : memref<16x32xbf16, #tpu.memory_space<vmem>>, vector<16x32xbf16>
      tpu.vector_store %arg10[%c0_32, %c0_33], %60 {strides = array<i32>} : memref<16x32xbf16, #tpu.memory_space<vmem>>, vector<16x32xbf16>,
      %62 = arith.truncf %59 : vector<16x32xf32> to vector<16x32xbf16>
      %c0_34 = arith.constant 0 : index
      %c0_35 = arith.constant 0 : index
      %63 = vector.load %arg4[%c0_34, %c0_35] : memref<32x5xbf16, #tpu.memory_space<vmem>>, vector<32x5xbf16>
      %cst_36 = arith.constant dense<0.000000e+00> : vector<16x5xf32>
      %64 = tpu.matmul %62, %63, %cst_36 {dimension_numbers = #tpu.dot_dimension_numbers<[1], [0], [0], [1], [0, 0, 1, 1], [], []>} : vector<16x32xbf16>, vector<32x5xbf16>, vector<16x5xf32> -> vector<16x5xf32>
      %cst_37 = arith.constant dense<0xFF800000> : vector<16xf32>
      %65 = vector.multi_reduction <maximumf>, %64, %cst_37 [1] : vector<16x5xf32> to vector<16xf32>
      %66 = vector.shape_cast %65 : vector<16xf32> to vector<16x1xf32>
      %67 = vector.broadcast %66 : vector<16x1xf32> to vector<16x5xf32>
      %68 = arith.cmpf oge, %64, %67 : vector<16x5xf32>
      %cst_38 = arith.constant -1.000000e+30 : f32
      %69 = vector.broadcast %cst_38 : f32 to vector<16x5xf32>
      %70 = arith.select %68, %69, %64 : vector<16x5xi1>, vector<16x5xf32>
      %cst_39 = arith.constant dense<0xFF800000> : vector<16xf32>
      %71 = vector.multi_reduction <maximumf>, %70, %cst_39 [1] : vector<16x5xf32> to vector<16xf32>
      %72 = vector.shape_cast %71 : vector<16xf32> to vector<16x1xf32>
      %73 = vector.broadcast %72 : vector<16x1xf32> to vector<16x5xf32>
      %74 = arith.cmpf oge, %64, %73 : vector<16x5xf32>
      %75 = vector.broadcast %66 : vector<16x1xf32> to vector<16x5xf32>
      %76 = arith.subf %64, %75 : vector<16x5xf32>
      %77 = math.exp %76 : vector<16x5xf32>
      %cst_40 = arith.constant 0.000000e+00 : f32
      %78 = vector.broadcast %cst_40 : f32 to vector<16x5xf32>
      %79 = arith.select %74, %77, %78 : vector<16x5xi1>, vector<16x5xf32>
      %cst_41 = arith.constant dense<0.000000e+00> : vector<16xf32>
      %80 = vector.multi_reduction <add>, %79, %cst_41 [1] : vector<16x5xf32> to vector<16xf32>
      %81 = vector.shape_cast %80 : vector<16xf32> to vector<16x1xf32>
      %82 = tpu.reciprocal %81 {approx = true} : vector<16x1xf32> -> vector<16x1xf32>
      %83 = vector.broadcast %82 : vector<16x1xf32> to vector<16x5xf32>
      %84 = arith.mulf %79, %83 : vector<16x5xf32>
      %c0_42 = arith.constant 0 : index
      %c0_43 = arith.constant 0 : index
      %85 = vector.load %arg11[%c0_42, %c0_43] : memref<16x5xf32, #tpu.memory_space<vmem>>, vector<16x5xf32>
      tpu.vector_store %arg11[%c0_42, %c0_43], %84 {strides = array<i32>} : memref<16x5xf32, #tpu.memory_space<vmem>>, vector<16x5xf32>,
      %cst_44 = arith.constant 0.000000e+00 : f32
      %86 = vector.broadcast %cst_44 : f32 to vector<16x32xf32>
      %c0_45 = arith.constant 0 : index
      %c0_46 = arith.constant 0 : index
      %87 = vector.load %arg12[%c0_45, %c0_46] : memref<16x32xf32, #tpu.memory_space<vmem>>, vector<16x32xf32>
      tpu.vector_store %arg12[%c0_45, %c0_46], %86 {strides = array<i32>} : memref<16x32xf32, #tpu.memory_space<vmem>>, vector<16x32xf32>,
    } else {
    }
    %c0_2 = arith.constant 0 : index
    %c0_3 = arith.constant 0 : index
    %4 = vector.load %arg10[%c0_2, %c0_3] : memref<16x32xbf16, #tpu.memory_space<vmem>>, vector<16x32xbf16>
    %c0_4 = arith.constant 0 : index
    %c0_5 = arith.constant 0 : index
    %c0_6 = arith.constant 0 : index
    %5 = vector.load %arg5[%c0_4, %c0_5, %c0_6] : memref<1x32x128xbf16, #tpu.memory_space<vmem>>, vector<1x32x128xbf16>
    %6 = vector.shape_cast %5 : vector<1x32x128xbf16> to vector<32x128xbf16>
    %cst = arith.constant dense<0.000000e+00> : vector<16x128xf32>
    %7 = tpu.matmul %4, %6, %cst {dimension_numbers = #tpu.dot_dimension_numbers<[1], [0], [0], [1], [0, 0, 1, 1], [], []>} : vector<16x32xbf16>, vector<32x128xbf16>, vector<16x128xf32> -> vector<16x128xf32>
    %c0_7 = arith.constant 0 : index
    %c0_8 = arith.constant 0 : index
    %c0_9 = arith.constant 0 : index
    %8 = vector.load %arg6[%c0_7, %c0_8, %c0_9] : memref<1x1x128xf32, #tpu.memory_space<vmem>>, vector<1x1x128xf32>
    %9 = vector.shape_cast %8 : vector<1x1x128xf32> to vector<1x128xf32>
    %10 = vector.broadcast %9 : vector<1x128xf32> to vector<16x128xf32>
    %11 = arith.addf %7, %10 : vector<16x128xf32>
    %12 = vector.extract_strided_slice %11 {offsets = [0, 0], sizes = [16, 64], strides = [1, 1]} : vector<16x128xf32> to vector<16x64xf32>
    %13 = vector.extract_strided_slice %11 {offsets = [0, 64], sizes = [16, 64], strides = [1, 1]} : vector<16x128xf32> to vector<16x64xf32>
    %14 = arith.negf %13 : vector<16x64xf32>
    %15 = math.exp %14 : vector<16x64xf32>
    %cst_10 = arith.constant 1.000000e+00 : f32
    %16 = vector.broadcast %cst_10 : f32 to vector<16x64xf32>
    %17 = arith.addf %16, %15 : vector<16x64xf32>
    %18 = arith.divf %16, %17 : vector<16x64xf32>
    %19 = arith.mulf %13, %18 : vector<16x64xf32>
    %20 = arith.mulf %12, %19 : vector<16x64xf32>
    %21 = arith.truncf %20 : vector<16x64xf32> to vector<16x64xbf16>
    %c0_11 = arith.constant 0 : index
    %c0_12 = arith.constant 0 : index
    %c0_13 = arith.constant 0 : index
    %22 = vector.load %arg7[%c0_11, %c0_12, %c0_13] : memref<1x64x32xbf16, #tpu.memory_space<vmem>>, vector<1x64x32xbf16>
    %23 = vector.shape_cast %22 : vector<1x64x32xbf16> to vector<64x32xbf16>
    %cst_14 = arith.constant dense<0.000000e+00> : vector<16x32xf32>
    %24 = tpu.matmul %21, %23, %cst_14 {dimension_numbers = #tpu.dot_dimension_numbers<[1], [0], [0], [1], [0, 0, 1, 1], [], []>} : vector<16x64xbf16>, vector<64x32xbf16>, vector<16x32xf32> -> vector<16x32xf32>
    %c0_15 = arith.constant 0 : index
    %c0_16 = arith.constant 0 : index
    %c0_17 = arith.constant 0 : index
    %25 = vector.load %arg8[%c0_15, %c0_16, %c0_17] : memref<1x1x32xf32, #tpu.memory_space<vmem>>, vector<1x1x32xf32>
    %26 = vector.shape_cast %25 : vector<1x1x32xf32> to vector<1x32xf32>
    %27 = vector.broadcast %26 : vector<1x32xf32> to vector<16x32xf32>
    %28 = arith.addf %24, %27 : vector<16x32xf32>
    %29 = tpu.iota {dimensions = array<i32: 1>} : vector<1x5xi32>
    %30 = vector.broadcast %arg1 : i32 to vector<1x5xi32>
    %31 = arith.cmpi eq, %29, %30 : vector<1x5xi32>
    %c0_18 = arith.constant 0 : index
    %c0_19 = arith.constant 0 : index
    %32 = vector.load %arg11[%c0_18, %c0_19] : memref<16x5xf32, #tpu.memory_space<vmem>>, vector<16x5xf32>
    %cst_20 = arith.constant 0.000000e+00 : f32
    %33 = vector.shape_cast %31 : vector<1x5xi1> to vector<1x5xi1>
    %34 = vector.broadcast %33 : vector<1x5xi1> to vector<16x5xi1>
    %35 = vector.broadcast %cst_20 : f32 to vector<16x5xf32>
    %36 = arith.select %34, %32, %35 : vector<16x5xi1>, vector<16x5xf32>
    %cst_21 = arith.constant dense<0.000000e+00> : vector<16xf32>
    %37 = vector.multi_reduction <add>, %36, %cst_21 [1] : vector<16x5xf32> to vector<16xf32>
    %38 = vector.shape_cast %37 : vector<16xf32> to vector<16x1xf32>
    %c0_22 = arith.constant 0 : index
    %c0_23 = arith.constant 0 : index
    %39 = vector.load %arg12[%c0_22, %c0_23] : memref<16x32xf32, #tpu.memory_space<vmem>>, vector<16x32xf32>
    %40 = vector.broadcast %38 : vector<16x1xf32> to vector<16x32xf32>
    %41 = arith.mulf %40, %28 : vector<16x32xf32>
    %42 = arith.addf %39, %41 : vector<16x32xf32>
    %c0_24 = arith.constant 0 : index
    %c0_25 = arith.constant 0 : index
    %43 = vector.load %arg12[%c0_24, %c0_25] : memref<16x32xf32, #tpu.memory_space<vmem>>, vector<16x32xf32>
    tpu.vector_store %arg12[%c0_24, %c0_25], %42 {strides = array<i32>} : memref<16x32xf32, #tpu.memory_space<vmem>>, vector<16x32xf32>,
    %c4_i32 = arith.constant 4 : i32
    %44 = arith.cmpi eq, %arg1, %c4_i32 : i32
    %45 = arith.extui %44 : i1 to i32
    %c0_i32_26 = arith.constant 0 : i32
    %46 = arith.cmpi ne, %45, %c0_i32_26 : i32
    scf.if %46 {
      %c0_27 = arith.constant 0 : index
      %c0_28 = arith.constant 0 : index
      %47 = vector.load %arg12[%c0_27, %c0_28] : memref<16x32xf32, #tpu.memory_space<vmem>>, vector<16x32xf32>
      %48 = arith.addf %0, %47 : vector<16x32xf32>
      %c0_29 = arith.constant 0 : index
      %c0_30 = arith.constant 0 : index
      %49 = vector.load %arg9[%c0_29, %c0_30] : memref<16x32xf32, #tpu.memory_space<vmem>>, vector<16x32xf32>
      tpu.vector_store %arg9[%c0_29, %c0_30], %48 {strides = array<i32>} : memref<16x32xf32, #tpu.memory_space<vmem>>, vector<16x32xf32>,
    } else {
    }
    return
  }
  func.func @transform_0(%arg0: i32, %arg1: i32) -> (i32, i32) {
    %c0_i32 = arith.constant 0 : i32
    %c0_i32_0 = arith.constant 0 : i32
    return %arg0, %c0_i32 : i32, i32
  }
  func.func @transform_1(%arg0: i32, %arg1: i32) -> (i32, i32) {
    %c0_i32 = arith.constant 0 : i32
    %c0_i32_0 = arith.constant 0 : i32
    %c0_i32_1 = arith.constant 0 : i32
    return %c0_i32, %c0_i32_0 : i32, i32
  }
  func.func @transform_2(%arg0: i32, %arg1: i32) -> (i32, i32) {
    %c0_i32 = arith.constant 0 : i32
    %c0_i32_0 = arith.constant 0 : i32
    %c0_i32_1 = arith.constant 0 : i32
    return %c0_i32, %c0_i32_0 : i32, i32
  }
  func.func @transform_3(%arg0: i32, %arg1: i32) -> (i32, i32, i32) {
    %c0_i32 = arith.constant 0 : i32
    %c0_i32_0 = arith.constant 0 : i32
    %c0_i32_1 = arith.constant 0 : i32
    return %arg1, %c0_i32, %c0_i32_0 : i32, i32, i32
  }
  func.func @transform_4(%arg0: i32, %arg1: i32) -> (i32, i32, i32) {
    %c0_i32 = arith.constant 0 : i32
    %c0_i32_0 = arith.constant 0 : i32
    %c0_i32_1 = arith.constant 0 : i32
    return %arg1, %c0_i32, %c0_i32_0 : i32, i32, i32
  }
  func.func @transform_5(%arg0: i32, %arg1: i32) -> (i32, i32, i32) {
    %c0_i32 = arith.constant 0 : i32
    %c0_i32_0 = arith.constant 0 : i32
    %c0_i32_1 = arith.constant 0 : i32
    return %arg1, %c0_i32, %c0_i32_0 : i32, i32, i32
  }
  func.func @transform_6(%arg0: i32, %arg1: i32) -> (i32, i32, i32) {
    %c0_i32 = arith.constant 0 : i32
    %c0_i32_0 = arith.constant 0 : i32
    %c0_i32_1 = arith.constant 0 : i32
    return %arg1, %c0_i32, %c0_i32_0 : i32, i32, i32
  }
  func.func @transform_7(%arg0: i32, %arg1: i32) -> (i32, i32) {
    %c0_i32 = arith.constant 0 : i32
    %c0_i32_0 = arith.constant 0 : i32
    return %arg0, %c0_i32 : i32, i32
  }
}

module attributes {stable_mosaic.version = 11 : i64} {
  func.func @_attn_layer_kernel(%arg0: i32, %arg1: memref<1x8x32xf32, #tpu.memory_space<vmem>>, %arg2: memref<1x32xf32, #tpu.memory_space<vmem>>, %arg3: memref<32x64xbf16, #tpu.memory_space<vmem>>, %arg4: memref<1x64xf32, #tpu.memory_space<vmem>>, %arg5: memref<8x16xf32, #tpu.memory_space<vmem>>, %arg6: memref<8x16xf32, #tpu.memory_space<vmem>>, %arg7: memref<8x8xf32, #tpu.memory_space<vmem>>, %arg8: memref<8x8xf32, #tpu.memory_space<vmem>>, %arg9: memref<4x8x32xbf16, #tpu.memory_space<vmem>>, %arg10: memref<1x32xf32, #tpu.memory_space<vmem>>, %arg11: memref<1x8x32xf32, #tpu.memory_space<vmem>>) attributes {dimension_semantics = [#tpu.dimension_semantics<parallel>], iteration_bounds = array<i64: 2>, scalar_prefetch = 0 : i64, scratch_operands = 0 : i64, tpu.core_type = #tpu.core_type<tc>, window_params = [{transform_indices = @transform_0, window_bounds = array<i64: 1, 8, 32>}, {pipeline_mode = #tpu.pipeline_mode<synchronous>, transform_indices = @transform_1, window_bounds = array<i64: 1, 32>}, {pipeline_mode = #tpu.pipeline_mode<synchronous>, transform_indices = @transform_2, window_bounds = array<i64: 32, 64>}, {pipeline_mode = #tpu.pipeline_mode<synchronous>, transform_indices = @transform_3, window_bounds = array<i64: 1, 64>}, {pipeline_mode = #tpu.pipeline_mode<synchronous>, transform_indices = @transform_4, window_bounds = array<i64: 8, 16>}, {pipeline_mode = #tpu.pipeline_mode<synchronous>, transform_indices = @transform_5, window_bounds = array<i64: 8, 16>}, {pipeline_mode = #tpu.pipeline_mode<synchronous>, transform_indices = @transform_6, window_bounds = array<i64: 8, 8>}, {pipeline_mode = #tpu.pipeline_mode<synchronous>, transform_indices = @transform_7, window_bounds = array<i64: 8, 8>}, {pipeline_mode = #tpu.pipeline_mode<synchronous>, transform_indices = @transform_8, window_bounds = array<i64: 4, 8, 32>}, {pipeline_mode = #tpu.pipeline_mode<synchronous>, transform_indices = @transform_9, window_bounds = array<i64: 1, 32>}, {transform_indices = @transform_10, window_bounds = array<i64: 1, 8, 32>}]} {
    %c0 = arith.constant 0 : index
    %c0_0 = arith.constant 0 : index
    %c0_1 = arith.constant 0 : index
    %0 = vector.load %arg1[%c0, %c0_0, %c0_1] : memref<1x8x32xf32, #tpu.memory_space<vmem>>, vector<1x8x32xf32>
    %1 = vector.shape_cast %0 : vector<1x8x32xf32> to vector<8x32xf32>
    %2 = arith.mulf %1, %1 : vector<8x32xf32>
    %cst = arith.constant dense<0.000000e+00> : vector<8xf32>
    %3 = vector.multi_reduction <add>, %2, %cst [1] : vector<8x32xf32> to vector<8xf32>
    %4 = vector.shape_cast %3 : vector<8xf32> to vector<8x1xf32>
    %cst_2 = arith.constant 3.200000e+01 : f32
    %5 = vector.broadcast %cst_2 : f32 to vector<8x1xf32>
    %6 = arith.divf %4, %5 : vector<8x1xf32>
    %c0_3 = arith.constant 0 : index
    %c0_4 = arith.constant 0 : index
    %7 = vector.load %arg2[%c0_3, %c0_4] : memref<1x32xf32, #tpu.memory_space<vmem>>, vector<1x32xf32>
    %8 = vector.broadcast %7 : vector<1x32xf32> to vector<8x32xf32>
    %9 = arith.mulf %8, %1 : vector<8x32xf32>
    %cst_5 = arith.constant 9.99999974E-6 : f32
    %10 = vector.broadcast %cst_5 : f32 to vector<8x1xf32>
    %11 = arith.addf %6, %10 : vector<8x1xf32>
    %12 = math.rsqrt %11 : vector<8x1xf32>
    %13 = vector.broadcast %12 : vector<8x1xf32> to vector<8x32xf32>
    %14 = arith.mulf %9, %13 : vector<8x32xf32>
    %15 = arith.truncf %14 : vector<8x32xf32> to vector<8x32xbf16>
    %c0_6 = arith.constant 0 : index
    %c0_7 = arith.constant 0 : index
    %16 = vector.load %arg3[%c0_6, %c0_7] : memref<32x64xbf16, #tpu.memory_space<vmem>>, vector<32x64xbf16>
    %cst_8 = arith.constant dense<0.000000e+00> : vector<8x64xf32>
    %17 = tpu.matmul %15, %16, %cst_8 {dimension_numbers = #tpu.dot_dimension_numbers<[1], [0], [0], [1], [0, 0, 1, 1], [], []>} : vector<8x32xbf16>, vector<32x64xbf16>, vector<8x64xf32> -> vector<8x64xf32>
    %c0_9 = arith.constant 0 : index
    %c0_10 = arith.constant 0 : index
    %18 = vector.load %arg4[%c0_9, %c0_10] : memref<1x64xf32, #tpu.memory_space<vmem>>, vector<1x64xf32>
    %19 = vector.broadcast %18 : vector<1x64xf32> to vector<8x64xf32>
    %20 = arith.addf %17, %19 : vector<8x64xf32>
    %21 = vector.extract_strided_slice %20 {offsets = [0, 0], sizes = [8, 32], strides = [1, 1]} : vector<8x64xf32> to vector<8x32xf32>
    %22 = vector.extract_strided_slice %20 {offsets = [0, 32], sizes = [8, 16], strides = [1, 1]} : vector<8x64xf32> to vector<8x16xf32>
    %23 = vector.extract_strided_slice %20 {offsets = [0, 48], sizes = [8, 16], strides = [1, 1]} : vector<8x64xf32> to vector<8x16xf32>
    %24 = vector.extract_strided_slice %21 {offsets = [0, 0], sizes = [8, 16], strides = [1, 1]} : vector<8x32xf32> to vector<8x16xf32>
    %25 = vector.extract_strided_slice %21 {offsets = [0, 16], sizes = [8, 16], strides = [1, 1]} : vector<8x32xf32> to vector<8x16xf32>
    %c0_11 = arith.constant 0 : index
    %c0_12 = arith.constant 0 : index
    %26 = vector.load %arg5[%c0_11, %c0_12] : memref<8x16xf32, #tpu.memory_space<vmem>>, vector<8x16xf32>
    %c0_13 = arith.constant 0 : index
    %c0_14 = arith.constant 0 : index
    %27 = vector.load %arg6[%c0_13, %c0_14] : memref<8x16xf32, #tpu.memory_space<vmem>>, vector<8x16xf32>
    %28 = arith.mulf %24, %26 : vector<8x16xf32>
    %29 = arith.mulf %25, %27 : vector<8x16xf32>
    %30 = arith.subf %28, %29 : vector<8x16xf32>
    %31 = arith.mulf %24, %27 : vector<8x16xf32>
    %32 = arith.mulf %25, %26 : vector<8x16xf32>
    %33 = arith.addf %31, %32 : vector<8x16xf32>
    %34 = vector.extract_strided_slice %22 {offsets = [0, 0], sizes = [8, 8], strides = [1, 1]} : vector<8x16xf32> to vector<8x8xf32>
    %35 = vector.extract_strided_slice %22 {offsets = [0, 8], sizes = [8, 8], strides = [1, 1]} : vector<8x16xf32> to vector<8x8xf32>
    %c0_15 = arith.constant 0 : index
    %c0_16 = arith.constant 0 : index
    %36 = vector.load %arg7[%c0_15, %c0_16] : memref<8x8xf32, #tpu.memory_space<vmem>>, vector<8x8xf32>
    %c0_17 = arith.constant 0 : index
    %c0_18 = arith.constant 0 : index
    %37 = vector.load %arg8[%c0_17, %c0_18] : memref<8x8xf32, #tpu.memory_space<vmem>>, vector<8x8xf32>
    %38 = arith.mulf %34, %36 : vector<8x8xf32>
    %39 = arith.mulf %35, %37 : vector<8x8xf32>
    %40 = arith.subf %38, %39 : vector<8x8xf32>
    %41 = arith.mulf %34, %37 : vector<8x8xf32>
    %42 = arith.mulf %35, %36 : vector<8x8xf32>
    %43 = arith.addf %41, %42 : vector<8x8xf32>
    %44 = vector.shape_cast %30 : vector<8x16xf32> to vector<8x4x4xf32>
    %45 = tpu.transpose %44, [1, 0, 2] : vector<8x4x4xf32> -> vector<4x8x4xf32>
    %46 = vector.shape_cast %33 : vector<8x16xf32> to vector<8x4x4xf32>
    %47 = tpu.transpose %46, [1, 0, 2] : vector<8x4x4xf32> -> vector<4x8x4xf32>
    %48 = tpu.concatenate %45, %47 in 2 : vector<4x8x4xf32>, vector<4x8x4xf32> -> vector<4x8x8xf32>
    %49 = arith.truncf %48 : vector<4x8x8xf32> to vector<4x8x8xbf16>
    %50 = vector.shape_cast %49 : vector<4x8x8xbf16> to vector<2x16x8xbf16>
    %51 = vector.shape_cast %40 : vector<8x8xf32> to vector<8x2x4xf32>
    %52 = tpu.transpose %51, [1, 0, 2] : vector<8x2x4xf32> -> vector<2x8x4xf32>
    %53 = vector.shape_cast %43 : vector<8x8xf32> to vector<8x2x4xf32>
    %54 = tpu.transpose %53, [1, 0, 2] : vector<8x2x4xf32> -> vector<2x8x4xf32>
    %55 = tpu.concatenate %52, %54 in 2 : vector<2x8x4xf32>, vector<2x8x4xf32> -> vector<2x8x8xf32>
    %56 = arith.truncf %55 : vector<2x8x8xf32> to vector<2x8x8xbf16>
    %57 = vector.shape_cast %23 : vector<8x16xf32> to vector<8x2x8xf32>
    %58 = tpu.transpose %57, [1, 0, 2] : vector<8x2x8xf32> -> vector<2x8x8xf32>
    %59 = arith.truncf %58 : vector<2x8x8xf32> to vector<2x8x8xbf16>
    "tpu.trace_start"() <{level = 10 : i32, message = "gqc,gkc->gqk"}> : () -> ()
    %cst_19 = arith.constant dense<0.000000e+00> : vector<2x16x8xf32>
    %60 = tpu.matmul %50, %56, %cst_19 {dimension_numbers = #tpu.dot_dimension_numbers<[2], [2], [1], [1], [0, 0, 0, 1, 1, 1], [0], [0]>} : vector<2x16x8xbf16>, vector<2x8x8xbf16>, vector<2x16x8xf32> -> vector<2x16x8xf32>
    "tpu.trace_stop"() : () -> ()
    %61 = tpu.iota {dimensions = array<i32: 0>} : vector<8x8xi32>
    %62 = tpu.concatenate %61, %61 in 0 : vector<8x8xi32>, vector<8x8xi32> -> vector<16x8xi32>
    %63 = tpu.iota {dimensions = array<i32: 1>} : vector<16x8xi32>
    %64 = arith.cmpi sle, %63, %62 : vector<16x8xi32>
    %65 = vector.shape_cast %64 : vector<16x8xi1> to vector<1x16x8xi1>
    %cst_20 = arith.constant -1.000000e+30 : f32
    %66 = vector.shape_cast %65 : vector<1x16x8xi1> to vector<1x16x8xi1>
    %67 = vector.broadcast %66 : vector<1x16x8xi1> to vector<2x16x8xi1>
    %68 = vector.broadcast %cst_20 : f32 to vector<2x16x8xf32>
    %69 = arith.select %67, %60, %68 : vector<2x16x8xi1>, vector<2x16x8xf32>
    %cst_21 = arith.constant dense<0xFF800000> : vector<2x16xf32>
    %70 = vector.multi_reduction <maximumf>, %69, %cst_21 [2] : vector<2x16x8xf32> to vector<2x16xf32>
    %71 = vector.shape_cast %70 : vector<2x16xf32> to vector<2x16x1xf32>
    %72 = vector.broadcast %71 : vector<2x16x1xf32> to vector<2x16x8xf32>
    %73 = arith.subf %69, %72 : vector<2x16x8xf32>
    %74 = math.exp %73 : vector<2x16x8xf32>
    %cst_22 = arith.constant dense<0.000000e+00> : vector<2x16xf32>
    %75 = vector.multi_reduction <add>, %74, %cst_22 [2] : vector<2x16x8xf32> to vector<2x16xf32>
    %76 = vector.shape_cast %75 : vector<2x16xf32> to vector<2x16x1xf32>
    %77 = tpu.reciprocal %76 {approx = true} : vector<2x16x1xf32> -> vector<2x16x1xf32>
    %78 = vector.broadcast %77 : vector<2x16x1xf32> to vector<2x16x8xf32>
    %79 = arith.mulf %74, %78 : vector<2x16x8xf32>
    %80 = arith.truncf %79 : vector<2x16x8xf32> to vector<2x16x8xbf16>
    "tpu.trace_start"() <{level = 10 : i32, message = "gqk,gkc->gqc"}> : () -> ()
    %cst_23 = arith.constant dense<0.000000e+00> : vector<2x16x8xf32>
    %81 = tpu.matmul %80, %59, %cst_23 {dimension_numbers = #tpu.dot_dimension_numbers<[2], [1], [1], [2], [0, 0, 0, 1, 1, 2], [0], [0]>} : vector<2x16x8xbf16>, vector<2x8x8xbf16>, vector<2x16x8xf32> -> vector<2x16x8xf32>
    "tpu.trace_stop"() : () -> ()
    %82 = vector.shape_cast %81 : vector<2x16x8xf32> to vector<4x8x8xf32>
    %83 = arith.truncf %82 : vector<4x8x8xf32> to vector<4x8x8xbf16>
    %c0_24 = arith.constant 0 : index
    %c0_25 = arith.constant 0 : index
    %c0_26 = arith.constant 0 : index
    %84 = vector.load %arg9[%c0_24, %c0_25, %c0_26] : memref<4x8x32xbf16, #tpu.memory_space<vmem>>, vector<4x8x32xbf16>
    "tpu.trace_start"() <{level = 10 : i32, message = "hsc,hcd->hsd"}> : () -> ()
    %cst_27 = arith.constant dense<0.000000e+00> : vector<4x8x32xf32>
    %85 = tpu.matmul %83, %84, %cst_27 {dimension_numbers = #tpu.dot_dimension_numbers<[2], [1], [1], [2], [0, 0, 0, 1, 1, 2], [0], [0]>} : vector<4x8x8xbf16>, vector<4x8x32xbf16>, vector<4x8x32xf32> -> vector<4x8x32xf32>
    "tpu.trace_stop"() : () -> ()
    %cst_28 = arith.constant dense<0.000000e+00> : vector<8x32xf32>
    %86 = vector.multi_reduction <add>, %85, %cst_28 [0] : vector<4x8x32xf32> to vector<8x32xf32>
    %87 = arith.addf %1, %86 : vector<8x32xf32>
    %c0_29 = arith.constant 0 : index
    %c0_30 = arith.constant 0 : index
    %88 = vector.load %arg10[%c0_29, %c0_30] : memref<1x32xf32, #tpu.memory_space<vmem>>, vector<1x32xf32>
    %89 = vector.broadcast %88 : vector<1x32xf32> to vector<8x32xf32>
    %90 = arith.addf %87, %89 : vector<8x32xf32>
    %c0_31 = arith.constant 0 : index
    %c0_32 = arith.constant 0 : index
    %c0_33 = arith.constant 0 : index
    %91 = vector.load %arg11[%c0_31, %c0_32, %c0_33] : memref<1x8x32xf32, #tpu.memory_space<vmem>>, vector<1x8x32xf32>
    %92 = vector.shape_cast %91 : vector<1x8x32xf32> to vector<8x32xf32>
    %93 = vector.shape_cast %90 : vector<8x32xf32> to vector<1x8x32xf32>
    tpu.vector_store %arg11[%c0_31, %c0_32, %c0_33], %93 {strides = array<i32>} : memref<1x8x32xf32, #tpu.memory_space<vmem>>, vector<1x8x32xf32>,
    return
  }
  func.func @transform_0(%arg0: i32) -> (i32, i32, i32) {
    %c0_i32 = arith.constant 0 : i32
    %c0_i32_0 = arith.constant 0 : i32
    %c0_i32_1 = arith.constant 0 : i32
    return %arg0, %c0_i32, %c0_i32_0 : i32, i32, i32
  }
  func.func @transform_1(%arg0: i32) -> (i32, i32) {
    %c0_i32 = arith.constant 0 : i32
    %c0_i32_0 = arith.constant 0 : i32
    %c0_i32_1 = arith.constant 0 : i32
    return %c0_i32, %c0_i32_0 : i32, i32
  }
  func.func @transform_2(%arg0: i32) -> (i32, i32) {
    %c0_i32 = arith.constant 0 : i32
    %c0_i32_0 = arith.constant 0 : i32
    %c0_i32_1 = arith.constant 0 : i32
    return %c0_i32, %c0_i32_0 : i32, i32
  }
  func.func @transform_3(%arg0: i32) -> (i32, i32) {
    %c0_i32 = arith.constant 0 : i32
    %c0_i32_0 = arith.constant 0 : i32
    %c0_i32_1 = arith.constant 0 : i32
    return %c0_i32, %c0_i32_0 : i32, i32
  }
  func.func @transform_4(%arg0: i32) -> (i32, i32) {
    %c0_i32 = arith.constant 0 : i32
    %c0_i32_0 = arith.constant 0 : i32
    %c0_i32_1 = arith.constant 0 : i32
    return %c0_i32, %c0_i32_0 : i32, i32
  }
  func.func @transform_5(%arg0: i32) -> (i32, i32) {
    %c0_i32 = arith.constant 0 : i32
    %c0_i32_0 = arith.constant 0 : i32
    %c0_i32_1 = arith.constant 0 : i32
    return %c0_i32, %c0_i32_0 : i32, i32
  }
  func.func @transform_6(%arg0: i32) -> (i32, i32) {
    %c0_i32 = arith.constant 0 : i32
    %c0_i32_0 = arith.constant 0 : i32
    %c0_i32_1 = arith.constant 0 : i32
    return %c0_i32, %c0_i32_0 : i32, i32
  }
  func.func @transform_7(%arg0: i32) -> (i32, i32) {
    %c0_i32 = arith.constant 0 : i32
    %c0_i32_0 = arith.constant 0 : i32
    %c0_i32_1 = arith.constant 0 : i32
    return %c0_i32, %c0_i32_0 : i32, i32
  }
  func.func @transform_8(%arg0: i32) -> (i32, i32, i32) {
    %c0_i32 = arith.constant 0 : i32
    %c0_i32_0 = arith.constant 0 : i32
    %c0_i32_1 = arith.constant 0 : i32
    %c0_i32_2 = arith.constant 0 : i32
    return %c0_i32, %c0_i32_0, %c0_i32_1 : i32, i32, i32
  }
  func.func @transform_9(%arg0: i32) -> (i32, i32) {
    %c0_i32 = arith.constant 0 : i32
    %c0_i32_0 = arith.constant 0 : i32
    %c0_i32_1 = arith.constant 0 : i32
    return %c0_i32, %c0_i32_0 : i32, i32
  }
  func.func @transform_10(%arg0: i32) -> (i32, i32, i32) {
    %c0_i32 = arith.constant 0 : i32
    %c0_i32_0 = arith.constant 0 : i32
    %c0_i32_1 = arith.constant 0 : i32
    return %arg0, %c0_i32, %c0_i32_0 : i32, i32, i32
  }
}

module attributes {stable_mosaic.version = 11 : i64} {
  func.func @_rms_kernel(%arg0: i32, %arg1: memref<16x32xf32, #tpu.memory_space<vmem>>, %arg2: memref<1x32xf32, #tpu.memory_space<vmem>>, %arg3: memref<16x32xf32, #tpu.memory_space<vmem>>) attributes {dimension_semantics = [#tpu.dimension_semantics<parallel>], iteration_bounds = array<i64: 1>, scalar_prefetch = 0 : i64, scratch_operands = 0 : i64, tpu.core_type = #tpu.core_type<tc>, window_params = [{transform_indices = @transform_0, window_bounds = array<i64: 16, 32>}, {pipeline_mode = #tpu.pipeline_mode<synchronous>, transform_indices = @transform_1, window_bounds = array<i64: 1, 32>}, {transform_indices = @transform_2, window_bounds = array<i64: 16, 32>}]} {
    %c0 = arith.constant 0 : index
    %c0_0 = arith.constant 0 : index
    %0 = vector.load %arg1[%c0, %c0_0] : memref<16x32xf32, #tpu.memory_space<vmem>>, vector<16x32xf32>
    %1 = arith.mulf %0, %0 : vector<16x32xf32>
    %cst = arith.constant dense<0.000000e+00> : vector<16xf32>
    %2 = vector.multi_reduction <add>, %1, %cst [1] : vector<16x32xf32> to vector<16xf32>
    %3 = vector.shape_cast %2 : vector<16xf32> to vector<16x1xf32>
    %cst_1 = arith.constant 3.200000e+01 : f32
    %4 = vector.broadcast %cst_1 : f32 to vector<16x1xf32>
    %5 = arith.divf %3, %4 : vector<16x1xf32>
    %c0_2 = arith.constant 0 : index
    %c0_3 = arith.constant 0 : index
    %6 = vector.load %arg2[%c0_2, %c0_3] : memref<1x32xf32, #tpu.memory_space<vmem>>, vector<1x32xf32>
    %7 = vector.broadcast %6 : vector<1x32xf32> to vector<16x32xf32>
    %8 = arith.mulf %7, %0 : vector<16x32xf32>
    %cst_4 = arith.constant 9.99999974E-6 : f32
    %9 = vector.broadcast %cst_4 : f32 to vector<16x1xf32>
    %10 = arith.addf %5, %9 : vector<16x1xf32>
    %11 = math.rsqrt %10 : vector<16x1xf32>
    %12 = vector.broadcast %11 : vector<16x1xf32> to vector<16x32xf32>
    %13 = arith.mulf %8, %12 : vector<16x32xf32>
    %c0_5 = arith.constant 0 : index
    %c0_6 = arith.constant 0 : index
    %14 = vector.load %arg3[%c0_5, %c0_6] : memref<16x32xf32, #tpu.memory_space<vmem>>, vector<16x32xf32>
    tpu.vector_store %arg3[%c0_5, %c0_6], %13 {strides = array<i32>} : memref<16x32xf32, #tpu.memory_space<vmem>>, vector<16x32xf32>,
    return
  }
  func.func @transform_0(%arg0: i32) -> (i32, i32) {
    %c0_i32 = arith.constant 0 : i32
    %c0_i32_0 = arith.constant 0 : i32
    return %arg0, %c0_i32 : i32, i32
  }
  func.func @transform_1(%arg0: i32) -> (i32, i32) {
    %c0_i32 = arith.constant 0 : i32
    %c0_i32_0 = arith.constant 0 : i32
    %c0_i32_1 = arith.constant 0 : i32
    return %c0_i32, %c0_i32_0 : i32, i32
  }
  func.func @transform_2(%arg0: i32) -> (i32, i32) {
    %c0_i32 = arith.constant 0 : i32
    %c0_i32_0 = arith.constant 0 : i32
    return %arg0, %c0_i32 : i32, i32
  }
}

</mosaic_0001>

<bundles_post_ra>
// kernel: decoder_forward.9
= control target key start
LH: loop header
LB: loop body
LE: loop exit
PB: predicated region body
PF: predicated region fallthrough
CT: control target
= control target key end

     0   :  { %vm15_vm0 = vcmask 261120   ;;  %s85_s0 = inlined_call_operand.vmem [shape: f32[16,32], index: 0, kind: input, shape index: {}, may-alias: {0,2}]   ;;  %s86_s1 = inlined_call_operand.vmem [shape: f32[1,32], index: 1, kind: input, shape index: {}]   ;;  %s87_s2 = inlined_call_operand.vmem [shape: f32[16,32], index: 2, kind: output, shape index: {}, may-alias: {0,2}]  }
   0x1   :  { %v11_v0 = vld [vmem:[%s85_s0] sm:$0xff]  ;;  %v12_v1 = vld [vmem:[%s85_s0 + $0x8] sm:$0xff] }
   0x2   :  { %v13_v2 = vmul.f32 %v11_v0, %v11_v0  ;;  %v14_v3 = vmul.f32 %v12_v1, %v12_v1  ;;  %v46_v12 = vld [vmem:[%s86_s1] ss:$0 sm:$0xff] }
   0x3   :  { %v32_v13 = vmul.f32 %v46_v12, %v11_v0  ;;  %v33_v15 = vmul.f32 %v46_v12, %v12_v1 }
   0x4   :  { %v16_v4 = vsel %vm15_vm0, %v13_v2, 0.0  ;;  %v19_v5 = vsel %vm15_vm0, %v14_v3, 0.0 }
   0x5   :  { %17 = vadd.xlane.f32.xlu0 %v16_v4 }
   0x9   :  { %20 = vadd.xlane.f32.xlu0 %v19_v5 }
  0x92   :  { %v18_v6 = vpop.xlane.xlu0 %17 }
  0x93   :  { %v23_v7 = vmul.f32 0.03125, %v18_v6 }
  0x95   :  { %v34_v8 = vadd.f32 1e-05, %v23_v7 }
  0x96   :  { %v21_v9 = vpop.xlane.xlu0 %20 }
  0x97   :  { %47 = vrsqrt.f32 %v34_v8  ;;  %v24_v10 = vmul.f32 0.03125, %v21_v9 }
  0x99   :  { %v35_v11 = vadd.f32 1e-05, %v24_v10 }
  0x9b   :  { %49 = vrsqrt.f32 %v35_v11 }
  0xa1   :  { %v48_v14 = vpop.eup %47 }
  0xa2   :  { %v38_v16 = vmul.f32 %v48_v14, %v32_v13 }
  0xa4   :  { %40 = vst.msk [vmem:[%s87_s2] sm:$0xff] %vm15_vm0, %v38_v16 }
  0xa5   :  { %v50_v17 = vpop.eup %49 }
  0xa6   :  { %v39_v18 = vmul.f32 %v50_v17, %v33_v15 }
  0xa8   :  { %41 = vst.msk [vmem:[%s87_s2 + $0x8] sm:$0xff] %vm15_vm0, %v39_v18 }

// kernel: decoder_forward.6
= control target key start
LH: loop header
LB: loop body
LE: loop exit
PB: predicated region body
PF: predicated region fallthrough
CT: control target
= control target key end

     0   :  { %s1017_s24 = smov 0   ;;  %s1019_s25 = smov 0   ;;  %s1141_s0 = inlined_call_operand.vmem [shape: f32[16,32], index: 0, kind: input, shape index: {}, may-alias: {0,7}]   ;;  %s1142_s1 = inlined_call_operand.vmem [shape: f32[1,32], index: 1, kind: input, shape index: {}]   ;;  %s1143_s2 = inlined_call_operand.vmem [shape: bf16[32,5], index: 2, kind: input, shape index: {}]   ;;  %s1144_s3 = inlined_call_operand.vmem [shape: bf16[5,32,128], index: 3, kind: input, shape index: {}]   ;;  %s1145_s4 = inlined_call_operand.vmem [shape: f32[5,1,128], index: 4, kind: input, shape index: {}]   ;;  %s1146_s5 = inlined_call_operand.vmem [shape: bf16[5,64,32], index: 5, kind: input, shape index: {}]   ;;  %s1147_s6 = inlined_call_operand.vmem [shape: f32[5,1,32], index: 6, kind: input, shape index: {}]   ;;  %s1148_s7 = inlined_call_operand.vmem [shape: f32[16,32], index: 7, kind: output, shape index: {}, may-alias: {0,7}]  }
   0x1   :  { %s1021_s26 = smov 0  }
   0x2 LB: > { %s26_s27 = sadd.s32 1, %s966_s25  ;;  %p823_p0 = scmp.ge.s32.totalorder %s970_s26, 1  ;;  %s970_s26 = sphi %s1021_s26, %s17_s26   ;;  %s966_s25 = sphi %s1019_s25, %s1150_s25   ;;  %s962_s24 = sphi %s1017_s24, %s1149_s24  }
   0x3   : > { %p27_p1 = scmp.ge.s32.totalorder %s26_s27, 5  ;;  %p286_p2 = scmp.lt.s32.totalorder %s970_s26, 6 }
   0x5   : > { %s1152_s27 = smov (%p27_p1, %s26_s27), 0  ;;  %p287_p3 = pnand %p823_p0, %p286_p2 }
   0x6   : > { %p340_p4 = scmp.lt.s32.totalorder (!%p287_p3), %s962_s24, 4  ;;  %v1041_v0 = vld [vmem:[%s1141_s0] sm:$0xff] (!%p287_p3)  ;;  %v1046_v1 = vld [vmem:[%s1141_s0 + $0x8] sm:$0xff] (!%p287_p3)  ;;  %p828_p5 = scmp.ne.s32.totalorder (!%p287_p3), %s962_s24, 0 }
   0x7   : > { %290 = sbr.rel (%p287_p3) target bundleno = 1451 (0x5ab), region = 48 }
   0xe   : > { %s1049_s9 = scalar_select %p340_p4, %s962_s24, 4 }
   0xf   : > { %368 = sbr.rel (%p828_p5) target bundleno = 846 (0x34e), region = 52  ;;  %v369_v2 = vmul.f32 (!%p828_p5), %v1041_v0, %v1041_v0  ;;  %vm371_vm0 = vcmask (!%p828_p5), 261120   ;;  %v370_v3 = vmul.f32 (!%p828_p5), %v1046_v1, %v1046_v1  ;;  %v920_v6 = vld [vmem:[%s1143_s2] sm:$0xff] (!%p828_p5)   ;;  %v972_v7 = vmov (!%p828_p5), 0.0   ;;  %v921_v8 = vld [vmem:[%s1143_s2 + $0x8] sm:$0xff] (!%p828_p5)  }
  0x10   : > { %s850_s10 = sshll.u32 %s1049_s9, 4  ;;  %s347_s13 = scalar_lea.vmem %s1145_s4, %s1049_s9  ;;  %863 = vmatprep.subr.bf16.mxu0 (!%p828_p5), %v972_v7  ;;  %497 = vst.msk [vmem:[#allocation4] sm:$0xff] (!%p828_p5), %vm371_vm0, %v972_v7  ;;  %498 = vst.msk [vmem:[#allocation4 + $0x8] sm:$0xff] (!%p828_p5), %vm371_vm0, %v972_v7  ;;  %vm973_vm1 = vmmov (!%p828_p5), 0   ;;  %v829_v15 = vld [vmem:[%s1142_s1] ss:$0 sm:$0xff] (!%p828_p5) }
  0x11   : > { %s1059_s16 = scalar_lea.vmem %s1144_s3, %s850_s10  ;;  %s851_s17 = sshll.u32 %s1049_s9, 5  ;;  %v372_v4 = vsel (!%p828_p5), %vm371_vm0, %v369_v2, 0.0  ;;  %v375_v5 = vsel (!%p828_p5), %vm371_vm0, %v370_v3, 0.0  ;;  %867 = vmatprep.mubr.msk.bf16.mxu0 (!%p828_p5), %vm973_vm1, %v972_v7  ;;  %864 = vmatpush3.bf16.msra.mxu0 (!%p828_p5), %v920_v6  ;;  %v388_v16 = vmul.f32 (!%p828_p5), %v829_v15, %v1041_v0  ;;  %v389_v17 = vmul.f32 (!%p828_p5), %v829_v15, %v1046_v1 }
  0x12   : > { %s1065_s20 = scalar_lea.vmem %s1146_s5, %s851_s17  ;;  %s355_s23 = scalar_lea.vmem %s1147_s6, %s1049_s9  ;;  %373 = vadd.xlane.f32.xlu0 (!%p828_p5), %v372_v4  ;;  %865 = vmatprep.subr.bf16.mxu0 (!%p828_p5), %v972_v7  ;;  %vm458_vm2 = vcmask (!%p828_p5), 39936  }
  0x15   : > { %866 = vmatpush3.bf16.msra.mxu0 (!%p828_p5), %v921_v8 }
  0x16   : > { %376 = vadd.xlane.f32.xlu0 %v375_v5 }
  0x9f   : > { %v374_v9 = vpop.xlane.xlu0 %373 }
  0xa0   : > { %v379_v10 = vmul.f32 0.03125, %v374_v9 }
  0xa2   : > { %v390_v11 = vadd.f32 1e-05, %v379_v10 }
  0xa3   : > { %v377_v12 = vpop.xlane.xlu0 %376 }
  0xa4   : > { %v380_v13 = vmul.f32 0.03125, %v377_v12  ;;  %922 = vrsqrt.f32 %v390_v11 }
  0xa6   : > { %v391_v14 = vadd.f32 1e-05, %v380_v13 }
  0xa8   : > { %924 = vrsqrt.f32 %v391_v14 }
  0xae   : > { %v923_v18 = vpop.eup %922 }
  0xaf   : > { %v394_v20 = vmul.f32 %v923_v18, %v388_v16 }
  0xb2   : > { %v925_v19 = vpop.eup %924 }
  0xb3   : > { %v395_v21 = vmul.f32 %v925_v19, %v389_v17 }
  0xb5   : > { %v396_v22 = vpack.c.bf16 %v395_v21, %v394_v20 }
  0xb7   : > { %397 = vst.msk [vmem:[#allocation2] sm:$0xff] %vm371_vm0, %v396_v22  ;;  %868 = vmatmul.mubr.msk.bf16.vlgmr.msra.gmra.mrb[0].mxu0 %vm371_vm0, %v396_v22 }
 0x18a   : > { %v451_v23 = vpop.f32.mrb[0].mxu0 }
 0x18b   : > { %v869_v24 = vpop.f32.mrb[1].mxu0  ;;  %v459_v25 = vsel %vm458_vm2, %v451_v23, -inf }
 0x18c   : > { %460 = vmax.xlane.f32.xlu1 %v459_v25  ;;  %v454_v26 = vpop.f32.mrb[2].mxu0 }
 0x18d   : > { %v870_v27 = vpop.f32.mrb[3].mxu0  ;;  %v462_v28 = vsel %vm458_vm2, %v454_v26, -inf }
 0x190   : > { %463 = vmax.xlane.f32.xlu1 %v462_v28 }
 0x219   : > { %v461_v29 = vpop.xlane.xlu1 %460 }
 0x21a   : > { %vm465_vm3 = vcmp.ge.f32.partialorder %v451_v23, %v461_v29  ;;  %v477_v30 = vsub.f32 %v451_v23, %v461_v29 }
 0x21b   : > { %v467_v31 = vsel %vm465_vm3, -1e+30, %v451_v23 }
 0x21c   : > { %v469_v32 = vsel %vm458_vm2, %v467_v31, -inf  ;;  %v479_v36 = vmul.f32 1.442695, %v477_v30 }
 0x21d   : > { %470 = vmax.xlane.f32.xlu0 %v469_v32  ;;  %v464_v33 = vpop.xlane.xlu1 %463 }
 0x21e   : > { %vm466_vm4 = vcmp.ge.f32.partialorder %v454_v26, %v464_v33  ;;  %v478_v37 = vsub.f32 %v454_v26, %v464_v33  ;;  %926 = vpow2.f32 %v479_v36 }
 0x21f   : > { %v468_v34 = vsel %vm466_vm4, -1e+30, %v454_v26 }
 0x220   : > { %v472_v35 = vsel %vm458_vm2, %v468_v34, -inf  ;;  %v481_v38 = vmul.f32 1.442695, %v478_v37 }
 0x221   : > { %473 = vmax.xlane.f32.xlu1 %v472_v35 }
 0x222   : > { %928 = vpow2.f32 %v481_v38 }
 0x228   : > { %v927_v40 = vpop.eup %926 }
 0x22c   : > { %v929_v44 = vpop.eup %928 }
 0x2aa   : > { %v471_v39 = vpop.xlane.xlu0 %470 }
 0x2ab   : > { %vm475_vm5 = vcmp.ge.f32.partialorder %v451_v23, %v471_v39 }
 0x2ac   : > { %v483_v41 = vsel %vm475_vm5, %v927_v40, 0.0 }
 0x2ad   : > { %v485_v42 = vsel %vm458_vm2, %v483_v41, 0.0 }
 0x2ae   : > { %486 = vadd.xlane.f32.xlu0 %v485_v42  ;;  %v474_v43 = vpop.xlane.xlu1 %473 }
 0x2af   : > { %vm476_vm6 = vcmp.ge.f32.partialorder %v454_v26, %v474_v43 }
 0x2b0   : > { %v484_v45 = vsel %vm476_vm6, %v929_v44, 0.0 }
 0x2b1   : > { %v488_v46 = vsel %vm458_vm2, %v484_v45, 0.0 }
 0x2b2   : > { %489 = vadd.xlane.f32.xlu1 %v488_v46 }
 0x33b   : > { %v487_v47 = vpop.xlane.xlu0 %486 }
 0x33c   : > { %930 = vrcp.f32 %v487_v47 }
 0x33f   : > { %v490_v48 = vpop.xlane.xlu1 %489 }
 0x340   : > { %932 = vrcp.f32 %v490_v48 }
 0x346   : > { %v931_v49 = vpop.eup %930 }
 0x347   : > { %v493_v50 = vmul.f32 %v931_v49, %v483_v41 }
 0x349   : > { %495 = vst.msk [vmem:[#allocation3] sm:$0xff] %vm458_vm2, %v493_v50 }
 0x34a   : > { %v933_v51 = vpop.eup %932 }
 0x34b   : > { %v494_v52 = vmul.f32 %v933_v51, %v484_v45 }
 0x34d   : > { %496 = vst.msk [vmem:[#allocation3 + $0x8] sm:$0xff] %vm458_vm2, %v494_v52 }
 0x34e PF: > { %v934_v53 = vld [vmem:[%s1059_s16] sm:$0xff]   ;;  %v974_v54 = vmov 0.0   ;;  %v935_v55 = vld [vmem:[%s1059_s16 + $0x8] sm:$0xff]   ;;  %vm975_vm7 = vmmov 0   ;;  %vm523_vm8 = vcmask 261120   ;;  %v938_v9 = vld [vmem:[%s1065_s20 + $0x10] sm:$0xff]   ;;  %v677_v12 = vlaneseq }
 0x34f   : > { %871 = vmatprep.subr.bf16.mxu0 %v974_v54  ;;  %879 = vmatprep.subr.bf16.mxu1 %v974_v54  ;;  %v499_v56 = vld [vmem:[#allocation2] sm:$0xff]  ;;  %v937_v58 = vld [vmem:[%s1065_s20 + $0x8] sm:$0xff]   ;;  %v939_v11 = vld [vmem:[%s1065_s20 + $0x18] sm:$0xff]   ;;  %v679_v13 = vstv %s962_s24  ;;  %vm687_vm9 = vcmask 39936   ;;  %vm632_vm11 = vcmask 523264   ;;  %p845_p6 = scmp.ne.s32.totalorder %s962_s24, 4 }
 0x350   : > { %872 = vmatpush3.bf16.msra.mxu0 %v934_v53  ;;  %875 = vmatprep.mubr.msk.bf16.mxu0 %vm975_vm7, %v974_v54  ;;  %v936_v57 = vld [vmem:[%s1065_s20] sm:$0xff]   ;;  %v678_v15 = vand.u32 127, %v677_v12  ;;  %v681_v16 = vld [vmem:[#allocation3] sm:$0xff]  ;;  %v694_v35 = vld [vmem:[#allocation4] sm:$0xff] }
 0x351   : > { %873 = vmatprep.subr.bf16.mxu0 %v974_v54  ;;  %887 = vmatprep.mubr.msk.bf16.mxu1 %vm975_vm7, %v974_v54  ;;  %v833_v59 = vld [vmem:[%s347_s13] ss:$0 sm:$0xff]  ;;  %s976_s13 = smov 64  }
 0x352   : > { %880 = vmatpush3.bf16.msra.mxu1 %v936_v57  ;;  %vm680_vm10 = vcmp.eq.s32.totalorder %v678_v15, %v679_v13  ;;  %v839_v31 = vld [vmem:[%s355_s23] ss:$0 sm:$0xff] }
 0x353   : > { %881 = vmatprep.subr.bf16.mxu1 %v974_v54  ;;  %v685_v20 = vsel %vm680_vm10, %v681_v16, 0.0  ;;  %v695_v41 = vld [vmem:[#allocation4 + $0x8] sm:$0xff] }
 0x354   : > { %874 = vmatpush3.bf16.msra.mxu0 %v935_v55  ;;  %v682_v17 = vld [vmem:[#allocation3 + $0x8] sm:$0xff]  ;;  %v688_v22 = vsel %vm687_vm9, %v685_v20, 0.0 }
 0x355   : > { %v686_v21 = vsel %vm680_vm10, %v682_v17, 0.0  ;;  %689 = vadd.xlane.f32.xlu1 %v688_v22 }
 0x356   : > { %882 = vmatpush3.bf16.msra.mxu1 %v937_v58  ;;  %v691_v24 = vsel %vm687_vm9, %v686_v21, 0.0 }
 0x357   : > { %876 = vmatmul.mubr.msk.bf16.vlgmr.msra.gmra.mrb[0].mxu0 %vm523_vm8, %v499_v56  ;;  %883 = vmatprep.subr.bf16.mxu1 %v974_v54 }
 0x359   : > { %692 = vadd.xlane.f32.xlu1 %v691_v24 }
 0x35a   : > { %884 = vmatpush3.bf16.msra.mxu1 %v938_v9 }
 0x35b   : > { %885 = vmatprep.subr.bf16.mxu1 %v974_v54 }
 0x35e   : > { %886 = vmatpush3.bf16.msra.mxu1 %v939_v11 }
 0x3e2   : > { %v690_v30 = vpop.xlane.xlu1 %689 }
 0x3e6   : > { %v693_v37 = vpop.xlane.xlu1 %692 }
 0x42a   : > { %v561_v60 = vpop.f32.mrb[0].mxu0 }
 0x42b   : > { %v562_v61 = vadd.f32 %v833_v59, %v561_v60  ;;  %v877_v62 = vpop.f32.mrb[1].mxu0 }
 0x42c   : > { %v564_v63 = vpop.f32.mrb[2].mxu0 }
 0x42d   : > { %v837_v2 = vmul.f32 -1.442695, %v562_v61  ;;  %v565_v3 = vadd.f32 %v833_v59, %v564_v63  ;;  %v878_v4 = vpop.f32.mrb[3].mxu0 }
 0x42f   : > { %940 = vpow2.f32 %v837_v2  ;;  %v838_v5 = vmul.f32 -1.442695, %v565_v3 }
 0x431   : > { %942 = vpow2.f32 %v838_v5 }
 0x439   : > { %v941_v6 = vpop.eup %940 }
 0x43a   : > { %v574_v7 = vadd.f32 1.0, %v941_v6 }
 0x43b   : > { %v943_v8 = vpop.eup %942 }
 0x43c   : > { %944 = vrcp.f32 %v574_v7  ;;  %v575_v10 = vadd.f32 1.0, %v943_v8 }
 0x43e   : > { %946 = vrcp.f32 %v575_v10 }
 0x446   : > { %v945_v14 = vpop.eup %944 }
 0x447   : > { %v580_v18 = vmul.f32 %v945_v14, %v562_v61 }
 0x448   : > { %v947_v19 = vpop.eup %946 }
 0x449   : > { %584 = vrot.lane.b32.xlu0 %v580_v18, %s976_s13  ;;  %v581_v23 = vmul.f32 %v947_v19, %v565_v3 }
 0x44d   : > { %586 = vrot.lane.b32.xlu0 %v581_v23, %s976_s13 }
 0x4bb   : > { %v585_v25 = vpop.permute.xlu0 %584 }
 0x4bc   : > { %v590_v27 = vmul.f32 %v585_v25, %v562_v61 }
 0x4bf   : > { %v587_v26 = vpop.permute.xlu0 %586 }
 0x4c0   : > { %v591_v28 = vmul.f32 %v587_v26, %v565_v3 }
 0x4c2   : > { %v592_v29 = vpack.c.bf16 %v591_v28, %v590_v27 }
 0x4c4   : > { %888 = vmatmul.mubr.msk.bf16.vlgmr.msra.gmra.mrb[0].mxu1 %vm632_vm11, %v592_v29 }
 0x597   : > { %v670_v32 = vpop.f32.mrb[0].mxu1 }
 0x598   : > { %v671_v33 = vadd.f32 %v839_v31, %v670_v32  ;;  %v889_v34 = vpop.f32.mrb[1].mxu1 }
 0x599   : > { %v673_v36 = vpop.f32.mrb[2].mxu1 }
 0x59a   : > { %v696_v38 = vmul.f32 %v690_v30, %v671_v33  ;;  %v674_v39 = vadd.f32 %v839_v31, %v673_v36  ;;  %v890_v40 = vpop.f32.mrb[3].mxu1  ;;  %705 = sbr.rel (%p845_p6) target bundleno = 1451 (0x5ab), region = 56 }
 0x59c   : > { %v698_v42 = vadd.f32 %v696_v38, %v694_v35  ;;  %v697_v43 = vmul.f32 %v693_v37, %v674_v39 }
 0x59e   : > { %700 = vst.msk [vmem:[#allocation4] sm:$0xff] %vm523_vm8, %v698_v42  ;;  %v699_v44 = vadd.f32 %v697_v43, %v695_v41 }
 0x5a0   : > { %701 = vst.msk [vmem:[#allocation4 + $0x8] sm:$0xff] %vm523_vm8, %v699_v44 }
 0x5a5   : > { %v706_v45 = vld [vmem:[#allocation4] sm:$0xff] }
 0x5a6   : > { %v708_v47 = vadd.f32 %v706_v45, %v1041_v0 }
 0x5a7   : > { %v707_v46 = vld [vmem:[#allocation4 + $0x8] sm:$0xff] }
 0x5a8   : > { %v709_v48 = vadd.f32 %v707_v46, %v1046_v1  ;;  %710 = vst.msk [vmem:[%s1148_s7] sm:$0xff] %vm523_vm8, %v708_v47 }
 0x5aa   : > { %711 = vst.msk [vmem:[%s1148_s7 + $0x8] sm:$0xff] %vm523_vm8, %v709_v48 }
 0x5ab PF: > { %s17_s26 = sadd.s32 1, %s970_s26   ;;  %s1149_s24 = smov %s966_s25 }
 0x5ac   : > { %p14_p7 = scmp.ge.s32.totalorder %s17_s26, 7   ;;  %s1150_s25 = smov %s1152_s27 }
 0x5ae   :  { %16 = sbr.rel (!%p14_p7) target bundleno = 2 (0x2), region = 98 }

// kernel: decoder_forward.5
= control target key start
LH: loop header
LB: loop body
LE: loop exit
PB: predicated region body
PF: predicated region fallthrough
CT: control target
= control target key end

     0   :  { %s1962_s13 = smov 0   ;;  %s2227_s0 = inlined_call_operand.vmem [shape: f32[2,8,32], index: 0, kind: input, shape index: {}, may-alias: {0,10}]   ;;  %s2228_s1 = inlined_call_operand.vmem [shape: f32[1,32], index: 1, kind: input, shape index: {}]   ;;  %s2229_s2 = inlined_call_operand.vmem [shape: bf16[32,64], index: 2, kind: input, shape index: {}]   ;;  %s2230_s3 = inlined_call_operand.vmem [shape: f32[1,64], index: 3, kind: input, shape index: {}]   ;;  %s2231_s4 = inlined_call_operand.vmem [shape: f32[8,16], index: 4, kind: input, shape index: {}]   ;;  %s2232_s5 = inlined_call_operand.vmem [shape: f32[8,16], index: 5, kind: input, shape index: {}]   ;;  %s2233_s6 = inlined_call_operand.vmem [shape: f32[8,8], index: 6, kind: input, shape index: {}]   ;;  %s2234_s7 = inlined_call_operand.vmem [shape: f32[8,8], index: 7, kind: input, shape index: {}]   ;;  %s2235_s8 = inlined_call_operand.vmem [shape: bf16[4,8,32], index: 8, kind: input, shape index: {}]   ;;  %s2236_s9 = inlined_call_operand.vmem [shape: f32[1,32], index: 9, kind: input, shape index: {}]   ;;  %s2237_s10 = inlined_call_operand.vmem [shape: f32[2,8,32], index: 10, kind: output, shape index: {}, may-alias: {0,10}]  }
   0x1 LB: > { %s1721_s14 = sadd.s32 4294967295, %s1891_s13   ;;  %p1725_p0 = scmp.ge.s32.totalorder %s1891_s13, 1  ;;  %s1891_s13 = sphi %s1962_s13, %s20_s13  }
   0x2   : > { %p311_p1 = scmp.lt.s32.totalorder %s1891_s13, 3 }
   0x4   : > { %p312_p2 = pnand %p1725_p0, %p311_p1 }
   0x5   : > { %p347_p3 = scmp.lt.s32.totalorder (!%p312_p2), %s1721_s14, 1  ;;  %vm358_vm0 = vcmask (!%p312_p2), 261120   ;;  %v1865_v3 = vld [vmem:[%s2229_s2] sm:$0xff] (!%p312_p2)   ;;  %v1893_v4 = vmov (!%p312_p2), 0.0   ;;  %vm1894_vm1 = vmmov (!%p312_p2), 0   ;;  %v1866_v5 = vld [vmem:[%s2229_s2 + $0x8] sm:$0xff] (!%p312_p2)   ;;  %v511_v51 = vlaneseq (!%p312_p2) }
   0x6   : > { %315 = sbr.rel (%p312_p2) target bundleno = 1916 (0x77c), region = 60  ;;  %1777 = vmatprep.subr.bf16.mxu0 (!%p312_p2), %v1893_v4  ;;  %1781 = vmatprep.mubr.msk.bf16.mxu0 (!%p312_p2), %vm1894_vm1, %v1893_v4  ;;  %v467_v6 = vld [vmem:[%s2234_s7] sm:$0xff] (!%p312_p2)  ;;  %s1895_s27 = smov (!%p312_p2), 40   ;;  %v1903_v49 = vmov (!%p312_p2), 1983009808   ;;  %vm804_vm2 = vcmask (!%p312_p2), 31744  }
   0x7   : > { %1778 = vmatpush3.bf16.msra.mxu0 (!%p312_p2), %v1865_v3  ;;  %1785 = vmatprep.subr.bf16.mxu1 (!%p312_p2), %v1893_v4  ;;  %v466_v7 = vld [vmem:[%s2233_s6] sm:$0xff] (!%p312_p2)  ;;  %s1896_s30 = smov (!%p312_p2), 32   ;;  %s1897_s11 = smov (!%p312_p2), 16   ;;  %v509_v50 = vunpack.c.l.s4 (!%p312_p2), %v1903_v49  ;;  %v2043_v53 = vshrl.u32 (!%p312_p2), %v511_v51, 7  ;;  %v1904_v54 = vmov (!%p312_p2), 1934713408  }
   0x8   : > { %1779 = vmatprep.subr.bf16.mxu0 (!%p312_p2), %v1893_v4  ;;  %1787 = vmatprep.mubr.msk.bf16.mxu1 (!%p312_p2), %vm1894_vm1, %v1893_v4  ;;  %v443_v8 = vld [vmem:[%s2232_s5] sm:$0xff] (!%p312_p2)  ;;  %s1898_s19 = smov (!%p312_p2), 120   ;;  %s1899_s22 = smov (!%p312_p2), 124   ;;  %v541_v55 = vunpack.c.l.s4 (!%p312_p2), %v1904_v54  ;;  %vm1207_vm3 = vcmask (!%p312_p2), 64512   ;;  %vm1367_vm5 = vcmask (!%p312_p2), 1043456  }
   0x9   : > { %474 = vrot.lane.b32.xlu1 (!%p312_p2), %v467_v6, %s1895_s27  ;;  %v1728_v12 = vld [vmem:[%s2228_s1] ss:$0 sm:$0xff] (!%p312_p2)  ;;  %s1900_s23 = smov (!%p312_p2), 112   ;;  %s1901_s24 = smov (!%p312_p2), 96   ;;  %v510_v52 = vunpack.c.0.s8 (!%p312_p2), %v509_v50 }
   0xa   : > { %v1729_v17 = vld [vmem:[%s2230_s3] ss:$0 sm:$0xff] (!%p312_p2)  ;;  %s1902_s25 = smov (!%p312_p2), 116   ;;  %v542_v57 = vunpack.c.0.s8 (!%p312_p2), %v541_v55  ;;  %s1905_s26 = smov (!%p312_p2), 4  }
   0xb   : > { %1780 = vmatpush3.bf16.msra.mxu0 (!%p312_p2), %v1866_v5  ;;  %v442_v25 = vld [vmem:[%s2231_s4] sm:$0xff] (!%p312_p2)  ;;  %v2046_v56 = vsub.s32 (!%p312_p2), %v510_v52, %v2043_v53 }
   0xc   : > { %1791 = vmatprep.subr.bf16.mxu0 (!%p312_p2), %v1893_v4  ;;  %v2051_v61 = vsub.s32 (!%p312_p2), %v542_v57, %v2043_v53 }
   0xd   : > { %s2239_s14 = smov (!%p347_p3, %s1721_s14), 1  ;;  %483 = vrot.lane.b32.xlu1 %v467_v6, %s1896_s30 }
   0xe   : > { %s1726_s15 = sshll.u32 %s2239_s14, 3 }
   0xf   : > { %s350_s18 = scalar_lea.vmem %s2227_s0, %s1726_s15 }
  0x10   : > { %v1978_v0 = vld [vmem:[%s350_s18] sm:$0xff] }
  0x11   : > { %v357_v1 = vmul.f32 %v1978_v0, %v1978_v0  ;;  %v371_v13 = vmul.f32 %v1728_v12, %v1978_v0 }
  0x13   : > { %v359_v2 = vsel %vm358_vm0, %v357_v1, 0.0 }
  0x14   : > { %360 = vadd.xlane.f32.xlu0 %v359_v2 }
  0x2a   : > { %487 = vrot.lane.b32.xlu0 %v466_v7, %s1895_s27  ;;  %s1906_s27 = smov 80  }
  0x2e   : > { %446 = vrot.lane.b32.xlu0 %v443_v8, %s1897_s11 }
  0x7b   : > { %v475_v26 = vpop.permute.xlu1 %474 }
  0x7f   : > { %v484_v28 = vpop.permute.xlu1 %483 }
  0xa1   : > { %v361_v9 = vpop.xlane.xlu0 %360 }
  0xa2   : > { %v363_v10 = vmul.f32 0.03125, %v361_v9 }
  0xa4   : > { %v372_v11 = vadd.f32 1e-05, %v363_v10 }
  0xa5   : > { %v488_v21 = vpop.permute.xlu0 %487 }
  0xa6   : > { %1867 = vrsqrt.f32 %v372_v11 }
  0xa9   : > { %v447_v35 = vpop.permute.xlu0 %446 }
  0xb0   : > { %v1868_v14 = vpop.eup %1867 }
  0xb1   : > { %v374_v15 = vmul.f32 %v1868_v14, %v371_v13 }
  0xb3   : > { %v375_v16 = vpack.c.bf16 %v374_v15, %v374_v15 }
  0xb5   : > { %1782 = vmatmul.mubr.msk.bf16.vlgmr.msra.gmra.mrb[0].mxu0 %vm358_vm0, %v375_v16 }
  0xb6   : > { %1793 = vmatprep.mubr.msk.bf16.mxu0 %vm1894_vm1, %v1893_v4 }
 0x188   : > { %v436_v18 = vpop.f32.mrb[0].mxu0 }
 0x189   : > { %v2016_v19 = vadd.f32 %v1729_v17, %v436_v18  ;;  %v1783_v20 = vpop.f32.mrb[1].mxu0 }
 0x18a   : > { %v439_v22 = vpop.f32.mrb[2].mxu0 }
 0x18b   : > { %v1784_v23 = vpop.f32.mrb[3].mxu0  ;;  %v490_v24 = vmul.f32 %v488_v21, %v2016_v19  ;;  %v477_v27 = vmul.f32 %v475_v26, %v2016_v19  ;;  %v486_v29 = vmul.f32 %v484_v28, %v2016_v19  ;;  %v449_v38 = vmul.f32 %v447_v35, %v2016_v19 }
 0x18c   : > { %v455_v41 = vmul.f32 %v443_v8, %v2016_v19  ;;  %v444_v45 = vmul.f32 %v442_v25, %v2016_v19 }
 0x18d   : > { %492 = vrot.lane.b32.xlu1 %v490_v24, %s1898_s19 }
 0x191   : > { %457 = vrot.lane.b32.xlu1 %v442_v25, %s1897_s11 }
 0x195   : > { %469 = vrot.lane.b32.xlu1 %v466_v7, %s1896_s30 }
 0x199   : > { %479 = vrot.lane.b32.xlu1 %v477_v27, %s1898_s19 }
 0x1ff   : > { %v493_v30 = vpop.permute.xlu1 %492 }
 0x200   : > { %v495_v31 = vadd.f32 %v493_v30, %v486_v29 }
 0x202   : > { %939 = vrot.lane.b32.xlu1 %v495_v31, %s1899_s22 }
 0x203   : > { %v458_v32 = vpop.permute.xlu1 %457 }
 0x204   : > { %v460_v33 = vmul.f32 %v458_v32, %v2016_v19 }
 0x206   : > { %462 = vrot.lane.b32.xlu1 %v460_v33, %s1900_s23 }
 0x207   : > { %v470_v34 = vpop.permute.xlu1 %469 }
 0x208   : > { %v472_v36 = vmul.f32 %v470_v34, %v2016_v19 }
 0x20a   : > { %941 = vrot.lane.b32.xlu1 %v495_v31, %s1901_s24 }
 0x20b   : > { %v480_v37 = vpop.permute.xlu1 %479 }
 0x20c   : > { %v482_v39 = vsub.f32 %v472_v36, %v480_v37 }
 0x20e   : > { %814 = vrot.lane.b32.xlu0 %v482_v39, %s1899_s22  ;;  %451 = vrot.lane.b32.xlu1 %v449_v38, %s1900_s23  ;;  %s354_s23 = scalar_lea.vmem %s2237_s10, %s1726_s15 }
 0x274   : > { %v940_v40 = vpop.permute.xlu1 %939 }
 0x275   : > { %943 = vrot.lane.b32.xlu0 %v940_v40, %s1901_s24 }
 0x278   : > { %v463_v42 = vpop.permute.xlu1 %462 }
 0x279   : > { %v465_v43 = vadd.f32 %v463_v42, %v455_v41 }
 0x27b   : > { %643 = vrot.lane.b32.xlu0 %v465_v43, %s1899_s22  ;;  %646 = vrot.lane.b32.xlu1 %v465_v43, %s1898_s19 }
 0x27c   : > { %v942_v44 = vpop.permute.xlu1 %941 }
 0x27d   : > { %v947_v58 = vcombine.high %v942_v44, %v1893_v4  ;;  %v954_v60 = vrot.slane %v942_v44, %v2046_v56 }
 0x27f   : > { %649 = vrot.lane.b32.xlu0 %v465_v43, %s1902_s25  ;;  %816 = vrot.lane.b32.xlu1 %v482_v39, %s1901_s24  ;;  %v961_v1 = vrot.slane %v947_v58, %v2046_v56 }
 0x280   : > { %v452_v46 = vpop.permute.xlu1 %451  ;;  %v815_v48 = vpop.permute.xlu0 %814 }
 0x281   : > { %v2035_v47 = vsub.f32 %v444_v45, %v452_v46 }
 0x283   : > { %497 = vrot.lane.b32.xlu1 %v2035_v47, %s1899_s22  ;;  %818 = vrot.lane.b32.xlu0 %v815_v48, %s1901_s24 }
 0x287   : > { %503 = vrot.lane.b32.xlu1 %v2035_v47, %s1902_s25  ;;  %500 = vrot.lane.b32.xlu0 %v2035_v47, %s1898_s19 }
 0x2e7   : > { %v944_v59 = vpop.permute.xlu0 %943 }
 0x2e8   : > { %v962_v62 = vcombine.high %v944_v59, %v1893_v4  ;;  %v969_v63 = vrot.slane %v944_v59, %v2046_v56 }
 0x2ea   : > { %v976_v2 = vrot.slane %v962_v62, %v2046_v56  ;;  %v977_v3 = vcombine.low %v954_v60, %v969_v63  ;;  %v978_v5 = vcombine.high %v954_v60, %v969_v63 }
 0x2ec   : > { %v985_v6 = vrot.slane %v977_v3, %v2051_v61  ;;  %v992_v7 = vrot.slane %v978_v5, %v2051_v61  ;;  %v993_v8 = vcombine.low %v961_v1, %v976_v2  ;;  %v994_v9 = vcombine.high %v961_v1, %v976_v2 }
 0x2ed   : > { %v647_v10 = vpop.permute.xlu1 %646  ;;  %v644_v11 = vpop.permute.xlu0 %643 }
 0x2ee   : > { %v1001_v12 = vrot.slane %v993_v8, %v2051_v61  ;;  %v1008_v13 = vrot.slane %v994_v9, %v2051_v61  ;;  %v1013_v14 = vcombine.low %v985_v6, %v992_v7  ;;  %v1739_v15 = vcombine.high %v985_v6, %v992_v7 }
 0x2ef   : > { %v652_v16 = vcombine.low %v465_v43, %v647_v10  ;;  %v653_v17 = vcombine.high %v465_v43, %v647_v10 }
 0x2f0   : > { %v1020_v18 = vrot.slane %v1013_v14, %v2046_v56  ;;  %v1028_v20 = vrot.slane %v1739_v15, %v2046_v56  ;;  %v1029_v21 = vcombine.low %v1001_v12, %v1008_v13  ;;  %v1740_v22 = vcombine.high %v1001_v12, %v1008_v13 }
 0x2f1   : > { %v650_v23 = vpop.permute.xlu0 %649  ;;  %v660_v29 = vrot.slane %v652_v16, %v2046_v56  ;;  %v667_v30 = vrot.slane %v653_v17, %v2046_v56  ;;  %v817_v12 = vpop.permute.xlu1 %816 }
 0x2f2   : > { %v668_v24 = vcombine.low %v644_v11, %v650_v23  ;;  %v669_v25 = vcombine.high %v644_v11, %v650_v23  ;;  %v1036_v26 = vrot.slane %v1029_v21, %v2046_v56  ;;  %v1044_v27 = vrot.slane %v1740_v22, %v2046_v56 }
 0x2f3   : > { %v1045_v28 = vcombine.low %v1020_v18, %v1028_v20  ;;  %v822_v14 = vcombine.high %v817_v12, %v1893_v4  ;;  %v829_v18 = vrot.slane %v817_v12, %v2046_v56 }
 0x2f4   : > { %v676_v31 = vrot.slane %v668_v24, %v2046_v56  ;;  %v683_v32 = vrot.slane %v669_v25, %v2046_v56  ;;  %v1053_v33 = vcombine.low %v1036_v26, %v1044_v27 }
 0x2f5   : > { %v1052_v38 = vrot.slane %v1045_v28, %v2051_v61  ;;  %v819_v11 = vpop.permute.xlu0 %818  ;;  %v836_v16 = vrot.slane %v822_v14, %v2046_v56  ;;  %v498_v20 = vpop.permute.xlu1 %497 }
 0x2f6   : > { %v684_v34 = vcombine.low %v660_v29, %v676_v31  ;;  %v685_v35 = vcombine.high %v660_v29, %v676_v31  ;;  %v700_v36 = vcombine.low %v667_v30, %v683_v32  ;;  %v701_v37 = vcombine.high %v667_v30, %v683_v32 }
 0x2f7   : > { %v1060_v39 = vrot.slane %v1053_v33, %v2051_v61  ;;  %v837_v13 = vcombine.high %v819_v11, %v1893_v4  ;;  %v844_v17 = vrot.slane %v819_v11, %v2046_v56 }
 0x2f8   : > { %v692_v40 = vrot.slane %v684_v34, %v2051_v61  ;;  %v699_v41 = vrot.slane %v685_v35, %v2051_v61  ;;  %v708_v42 = vrot.slane %v700_v36, %v2051_v61  ;;  %v715_v43 = vrot.slane %v701_v37, %v2051_v61 }
 0x2f9   : > { %v1061_v44 = vcombine.low %v1052_v38, %v1060_v39  ;;  %v1062_v57 = vcombine.high %v1052_v38, %v1060_v39  ;;  %v851_v15 = vrot.slane %v837_v13, %v2046_v56  ;;  %v852_v23 = vcombine.low %v829_v18, %v844_v17  ;;  %v504_v29 = vpop.permute.xlu1 %503  ;;  %v501_v30 = vpop.permute.xlu0 %500 }
 0x2fa   : > { %v720_v45 = vcombine.low %v692_v40, %v699_v41  ;;  %v1735_v46 = vcombine.high %v692_v40, %v699_v41  ;;  %v736_v48 = vcombine.low %v708_v42, %v715_v43  ;;  %v1736_v49 = vcombine.high %v708_v42, %v715_v43 }
 0x2fb   : > { %1065 = vrot.lane.b32.xlu0 %v1061_v44, %s1905_s26  ;;  %v868_v21 = vcombine.low %v836_v16, %v851_v15  ;;  %v869_v22 = vcombine.high %v836_v16, %v851_v15  ;;  %v853_v24 = vcombine.high %v829_v18, %v844_v17  ;;  %v860_v27 = vrot.slane %v852_v23, %v2051_v61 }
 0x2fc   : > { %v727_v50 = vrot.slane %v720_v45, %v2046_v56  ;;  %v735_v52 = vrot.slane %v1735_v46, %v2046_v56  ;;  %v743_v54 = vrot.slane %v736_v48, %v2046_v56  ;;  %v751_v55 = vrot.slane %v1736_v49, %v2046_v56 }
 0x2fd   : > { %v876_v25 = vrot.slane %v868_v21, %v2051_v61  ;;  %v883_v26 = vrot.slane %v869_v22, %v2051_v61  ;;  %v867_v28 = vrot.slane %v853_v24, %v2051_v61  ;;  %v522_v33 = vcombine.low %v498_v20, %v504_v29 }
 0x2fe   : > { %v752_v58 = vcombine.low %v727_v50, %v735_v52  ;;  %v768_v60 = vcombine.low %v743_v54, %v751_v55  ;;  %v753_v62 = vcombine.high %v727_v50, %v735_v52  ;;  %v769_v63 = vcombine.high %v743_v54, %v751_v55 }
 0x2ff   : > { %1067 = vrot.lane.b32.xlu0 %v1062_v57, %s1905_s26  ;;  %v904_v31 = vcombine.low %v876_v25, %v883_v26  ;;  %v1738_v32 = vcombine.high %v876_v25, %v883_v26  ;;  %v506_v34 = vcombine.low %v2035_v47, %v501_v30  ;;  %v888_v35 = vcombine.low %v860_v27, %v867_v28 }
 0x300   : > { %v760_v59 = vrot.slane %v752_v58, %v2051_v61  ;;  %v776_v1 = vrot.slane %v768_v60, %v2051_v61  ;;  %v767_v2 = vrot.slane %v753_v62, %v2051_v61  ;;  %v783_v3 = vrot.slane %v769_v63, %v2051_v61 }
 0x301   : > { %v1737_v36 = vcombine.high %v860_v27, %v867_v28  ;;  %v523_v37 = vcombine.high %v498_v20, %v504_v29  ;;  %v507_v38 = vcombine.high %v2035_v47, %v501_v30  ;;  %v911_v39 = vrot.slane %v904_v31, %v2046_v56 }
 0x302   : > { %v784_v5 = vcombine.low %v760_v59, %v776_v1  ;;  %v785_v6 = vcombine.high %v760_v59, %v776_v1  ;;  %v786_v8 = vcombine.low %v767_v2, %v783_v3  ;;  %v787_v9 = vcombine.high %v767_v2, %v783_v3 }
 0x303   : > { %v919_v40 = vrot.slane %v1738_v32, %v2046_v56  ;;  %v530_v41 = vrot.slane %v522_v33, %v2046_v56  ;;  %v514_v42 = vrot.slane %v506_v34, %v2046_v56  ;;  %v895_v43 = vrot.slane %v888_v35, %v2046_v56 }
 0x304   : > { %v1855_v7 = vpack.i.bf16 %v785_v6, %v784_v5  ;;  %v1860_v10 = vpack.i.bf16 %v787_v9, %v786_v8  ;;  %v903_v44 = vrot.slane %v1737_v36, %v2046_v56  ;;  %v537_v45 = vrot.slane %v523_v37, %v2046_v56 }
 0x305   : > { %v521_v46 = vrot.slane %v507_v38, %v2046_v56  ;;  %v928_v48 = vcombine.low %v911_v39, %v919_v40  ;;  %v538_v49 = vcombine.low %v514_v42, %v530_v41  ;;  %v539_v50 = vcombine.high %v514_v42, %v530_v41 }
 0x306   : > { %1856 = vrot.lane.b32.xlu1 %v1855_v7, %s1905_s26  ;;  %v920_v54 = vcombine.low %v895_v43, %v903_v44  ;;  %v1310_v44 = vand.u32 127, %v511_v51 }
 0x307   : > { %v554_v47 = vcombine.low %v521_v46, %v537_v45  ;;  %v555_v52 = vcombine.high %v521_v46, %v537_v45  ;;  %v935_v55 = vrot.slane %v928_v48, %v2051_v61  ;;  %v546_v57 = vrot.slane %v538_v49, %v2051_v61 }
 0x308   : > { %v553_v58 = vrot.slane %v539_v50, %v2051_v61  ;;  %v927_v62 = vrot.slane %v920_v54, %v2051_v61  ;;  %vm1311_vm4 = vcmp.le.s32.totalorder %v1310_v44, %v2043_v53 }
 0x309   : > { %v562_v59 = vrot.slane %v554_v47, %v2051_v61  ;;  %v569_v60 = vrot.slane %v555_v52, %v2051_v61 }
 0x30a   : > { %1861 = vrot.lane.b32.xlu1 %v1860_v10, %s1905_s26  ;;  %v936_v63 = vcombine.low %v927_v62, %v935_v55  ;;  %v574_v1 = vcombine.low %v546_v57, %v553_v58  ;;  %v1733_v3 = vcombine.high %v546_v57, %v553_v58  ;;  %v937_v14 = vcombine.high %v927_v62, %v935_v55 }
 0x30b   : > { %v590_v5 = vcombine.low %v562_v59, %v569_v60  ;;  %v1734_v6 = vcombine.high %v562_v59, %v569_v60 }
 0x30c   : > { %v581_v10 = vrot.slane %v574_v1, %v2046_v56  ;;  %v589_v11 = vrot.slane %v1733_v3, %v2046_v56 }
 0x30d   : > { %v597_v12 = vrot.slane %v590_v5, %v2046_v56  ;;  %v605_v13 = vrot.slane %v1734_v6, %v2046_v56 }
 0x30e   : > { %v606_v16 = vcombine.low %v581_v10, %v589_v11  ;;  %v607_v21 = vcombine.high %v581_v10, %v589_v11 }
 0x30f   : > { %v622_v17 = vcombine.low %v597_v12, %v605_v13  ;;  %v623_v22 = vcombine.high %v597_v12, %v605_v13 }
 0x310   : > { %v614_v24 = vrot.slane %v606_v16, %v2051_v61  ;;  %v621_v27 = vrot.slane %v607_v21, %v2051_v61 }
 0x311   : > { %v630_v25 = vrot.slane %v622_v17, %v2051_v61  ;;  %v637_v28 = vrot.slane %v623_v22, %v2051_v61 }
 0x313   : > { %v638_v31 = vcombine.low %v614_v24, %v630_v25  ;;  %v639_v32 = vcombine.high %v614_v24, %v630_v25  ;;  %v640_v39 = vcombine.low %v621_v27, %v637_v28  ;;  %v641_v40 = vcombine.high %v621_v27, %v637_v28 }
 0x36d   : > { %v1066_v2 = vpop.permute.xlu0 %1065 }
 0x36e   : > { %v1071_v7 = vsel %vm804_vm2, %v936_v63, %v1066_v2 }
 0x36f   : > { %v1073_v8 = vpack.c.bf16 %v1071_v7, %v1071_v7 }
 0x371   : > { %v1212_v9 = vsel %vm1207_vm3, %v1073_v8, 0  ;;  %v1068_v15 = vpop.permute.xlu0 %1067 }
 0x372   : > { %1786 = vmatpush3.bf16.xpose.msra.mxu1 %v1212_v9  ;;  %v1072_v18 = vsel %vm804_vm2, %v937_v14, %v1068_v15 }
 0x373   : > { %1797 = vmatprep.subr.bf16.mxu1 %v1893_v4  ;;  %v1074_v20 = vpack.c.bf16 %v1072_v18, %v1072_v18 }
 0x375   : > { %v1264_v23 = vsel %vm1207_vm3, %v1074_v20, 0 }
 0x376   : > { %1792 = vmatpush3.bf16.xpose.msra.mxu0 %v1264_v23 }
 0x377   : > { %1803 = vmatprep.subr.bf16.mxu0 %v1893_v4 }
 0x378   : > { %v1857_v26 = vpop.permute.xlu1 %1856 }
 0x379   : > { %v1859_v29 = vunpack.i.h.bf16 %v1857_v26  ;;  %v1858_v30 = vunpack.i.l.bf16 %v1857_v26 }
 0x37b   : > { %v805_v33 = vsel %vm804_vm2, %v638_v31, %v1858_v30  ;;  %v806_v34 = vsel %vm804_vm2, %v639_v32, %v1859_v29 }
 0x37c   : > { %v1756_v35 = vpack.c.bf16 %v806_v34, %v805_v33  ;;  %v1862_v36 = vpop.permute.xlu1 %1861 }
 0x37d   : > { %v1864_v37 = vunpack.i.h.bf16 %v1862_v36  ;;  %v1863_v38 = vunpack.i.l.bf16 %v1862_v36 }
 0x37e   : > { %1788 = vmatmul.mubr.msk.bf16.vlgmr.msra.gmra.mrb[0].mxu1 %vm1207_vm3, %v1756_v35 }
 0x37f   : > { %v807_v41 = vsel %vm804_vm2, %v640_v39, %v1863_v38  ;;  %v808_v42 = vsel %vm804_vm2, %v641_v40, %v1864_v37  ;;  %1799 = vmatprep.mubr.msk.bf16.mxu1 %vm1894_vm1, %v1893_v4 }
 0x380   : > { %v1757_v43 = vpack.c.bf16 %v808_v42, %v807_v41 }
 0x382   : > { %1794 = vmatmul.mubr.msk.bf16.vlgmr.msra.gmra.mrb[4].mxu0 %vm1207_vm3, %v1757_v43 }
 0x383   : > { %1805 = vmatprep.mubr.msk.bf16.mxu0 %vm1894_vm1, %v1893_v4 }
 0x451   : > { %v1248_v45 = vpop.f32.mrb[0].mxu1 }
 0x452   : > { %v1314_v46 = vsel %vm1311_vm4, %v1248_v45, -1e+30  ;;  %v1789_v48 = vpop.f32.mrb[1].mxu1 }
 0x453   : > { %v1251_v49 = vpop.f32.mrb[2].mxu1  ;;  %v1318_v50 = vsel %vm1207_vm3, %v1314_v46, -inf }
 0x454   : > { %v1315_v47 = vsel %vm1311_vm4, %v1251_v49, -1e+30  ;;  %1319 = vmax.xlane.f32.xlu0 %v1318_v50  ;;  %v1790_v52 = vpop.f32.mrb[3].mxu1 }
 0x455   : > { %v1300_v54 = vpop.f32.mrb[4].mxu0  ;;  %v1321_v55 = vsel %vm1207_vm3, %v1315_v47, -inf }
 0x456   : > { %v1316_v51 = vsel %vm1311_vm4, %v1300_v54, -1e+30  ;;  %1322 = vmax.xlane.f32.xlu1 %v1321_v55  ;;  %v1795_v57 = vpop.f32.mrb[5].mxu0 }
 0x457   : > { %v1303_v58 = vpop.f32.mrb[6].mxu0  ;;  %v1324_v59 = vsel %vm1207_vm3, %v1316_v51, -inf }
 0x458   : > { %v1317_v60 = vsel %vm1311_vm4, %v1303_v58, -1e+30  ;;  %1325 = vmax.xlane.f32.xlu0 %v1324_v59  ;;  %v1796_v62 = vpop.f32.mrb[7].mxu0 }
 0x459   : > { %v1327_v63 = vsel %vm1207_vm3, %v1317_v60, -inf }
 0x45c   : > { %1328 = vmax.xlane.f32.xlu0 %v1327_v63 }
 0x467   : > { %1076 = vrot.lane.b32.xlu1 %v2016_v19, %s1898_s19 }
 0x4e1   : > { %v1320_v1 = vpop.xlane.xlu0 %1319 }
 0x4e2   : > { %v1330_v2 = vsub.f32 %v1314_v46, %v1320_v1 }
 0x4e3   : > { %v1323_v3 = vpop.xlane.xlu1 %1322 }
 0x4e4   : > { %v1334_v5 = vmul.f32 1.442695, %v1330_v2  ;;  %v1331_v6 = vsub.f32 %v1315_v47, %v1323_v3 }
 0x4e5   : > { %v1326_v11 = vpop.xlane.xlu0 %1325 }
 0x4e6   : > { %1869 = vpow2.f32 %v1334_v5  ;;  %v1336_v7 = vmul.f32 1.442695, %v1331_v6  ;;  %v1332_v13 = vsub.f32 %v1316_v51, %v1326_v11 }
 0x4e7   : > { %v1077_v8 = vpop.permute.xlu1 %1076 }
 0x4e8   : > { %1871 = vpow2.f32 %v1336_v7  ;;  %1080 = vrot.lane.b32.xlu1 %v1077_v8, %s1906_s27  ;;  %v1338_v14 = vmul.f32 1.442695, %v1332_v13 }
 0x4e9   : > { %v1329_v17 = vpop.xlane.xlu0 %1328 }
 0x4ea   : > { %1873 = vpow2.f32 %v1338_v14  ;;  %v1333_v18 = vsub.f32 %v1317_v60, %v1329_v17  ;;  %v1466_v14 = vld [vmem:[%s2235_s8 + $0xc] sm:$0xf] }
 0x4ec   : > { %v1340_v20 = vmul.f32 1.442695, %v1333_v18 }
 0x4ee   : > { %1875 = vpow2.f32 %v1340_v20 }
 0x4f0   : > { %v1870_v53 = vpop.eup %1869 }
 0x4f1   : > { %v1342_v9 = vsel %vm1207_vm3, %v1870_v53, 0.0 }
 0x4f2   : > { %v1872_v10 = vpop.eup %1871  ;;  %1343 = vadd.xlane.f32.xlu0 %v1342_v9 }
 0x4f3   : > { %v1345_v12 = vsel %vm1207_vm3, %v1872_v10, 0.0 }
 0x4f4   : > { %v2151_v15 = vpop.eup %1873 }
 0x4f5   : > { %v1348_v16 = vsel %vm1207_vm3, %v2151_v15, 0.0 }
 0x4f6   : > { %1346 = vadd.xlane.f32.xlu0 %v1345_v12  ;;  %v1465_v12 = vld [vmem:[%s2235_s8 + $0x8] sm:$0xf] }
 0x4f7   : > { %v1563_v17 = vsel %vm1367_vm5, %v1465_v12, 0 }
 0x4f8   : > { %v1876_v21 = vpop.eup %1875 }
 0x4f9   : > { %v1351_v22 = vsel %vm1207_vm3, %v1876_v21, 0.0 }
 0x50c   : > { %1078 = vrot.lane.b32.xlu0 %v2016_v19, %s1906_s27  ;;  %1349 = vadd.xlane.f32.xlu1 %v1348_v16 }
 0x52b   : > { %1352 = vadd.xlane.f32.xlu0 %v1351_v22  ;;  %v1609_v22 = vsel %vm1367_vm5, %v1466_v14, 0 }
 0x55a   : > { %v1081_v24 = vpop.permute.xlu1 %1080 }
 0x55b   : > { %v1099_v26 = vcombine.high %v1081_v24, %v1893_v4  ;;  %v1106_v28 = vrot.slane %v1081_v24, %v2046_v56 }
 0x55d   : > { %v1113_v30 = vrot.slane %v1099_v26, %v2046_v56 }
 0x57f   : > { %v1344_v23 = vpop.xlane.xlu0 %1343 }
 0x583   : > { %v1347_v25 = vpop.xlane.xlu0 %1346 }
 0x584   : > { %1877 = vrcp.f32 %v1347_v25 }
 0x585   : > { %1879 = vrcp.f32 %v1344_v23 }
 0x587   : > { %v1079_v27 = vpop.permute.xlu0 %1078 }
 0x588   : > { %v1084_v29 = vcombine.high %v1079_v27, %v1893_v4  ;;  %v1091_v19 = vrot.slane %v1079_v27, %v2046_v56 }
 0x58a   : > { %v1098_v31 = vrot.slane %v1084_v29, %v2046_v56  ;;  %v1114_v32 = vcombine.low %v1091_v19, %v1106_v28  ;;  %v1115_v33 = vcombine.high %v1091_v19, %v1106_v28 }
 0x58c   : > { %v1122_v34 = vrot.slane %v1114_v32, %v2051_v61  ;;  %v1129_v35 = vrot.slane %v1115_v33, %v2051_v61  ;;  %v1130_v36 = vcombine.low %v1098_v31, %v1113_v30  ;;  %v1131_v37 = vcombine.high %v1098_v31, %v1113_v30 }
 0x58e   : > { %v1138_v38 = vrot.slane %v1130_v36, %v2051_v61  ;;  %v1145_v39 = vrot.slane %v1131_v37, %v2051_v61  ;;  %v1150_v40 = vcombine.low %v1122_v34, %v1129_v35  ;;  %v1741_v41 = vcombine.high %v1122_v34, %v1129_v35  ;;  %v1878_v54 = vpop.eup %1877 }
 0x58f   : > { %v1880_v57 = vpop.eup %1879  ;;  %v1359_v58 = vmul.f32 %v1878_v54, %v1872_v10  ;;  %v1464_v10 = vld [vmem:[%s2235_s8 + $0x4] sm:$0xf] }
 0x590   : > { %v1157_v42 = vrot.slane %v1150_v40, %v2046_v56  ;;  %v1165_v43 = vrot.slane %v1741_v41, %v2046_v56  ;;  %v1166_v44 = vcombine.low %v1138_v38, %v1145_v39  ;;  %v1742_v45 = vcombine.high %v1138_v38, %v1145_v39 }
 0x591   : > { %v1358_v62 = vmul.f32 %v1880_v57, %v1870_v53  ;;  %v1463_v53 = vld [vmem:[%s2235_s8] sm:$0xf]  ;;  %v1517_v11 = vsel %vm1367_vm5, %v1464_v10, 0 }
 0x592   : > { %v1173_v46 = vrot.slane %v1166_v44, %v2046_v56  ;;  %v1181_v48 = vrot.slane %v1742_v45, %v2046_v56  ;;  %v1182_v49 = vcombine.low %v1157_v42, %v1165_v43  ;;  %v1471_v9 = vsel %vm1367_vm5, %v1463_v53, 0 }
 0x593   : > { %v1362_v56 = vpack.c.bf16 %v1359_v58, %v1358_v62 }
 0x594   : > { %v1190_v50 = vcombine.low %v1173_v46, %v1181_v48  ;;  %v1189_v47 = vrot.slane %v1182_v49, %v2051_v61 }
 0x596   : > { %v1197_v52 = vrot.slane %v1190_v50, %v2051_v61  ;;  %v1753_v50 = vld [vmem:[%s2236_s9] ss:$0 sm:$0xff] }
 0x598   : > { %v1198_v55 = vcombine.low %v1189_v47, %v1197_v52  ;;  %v1199_v51 = vcombine.high %v1189_v47, %v1197_v52 }
 0x599   : > { %v1350_v61 = vpop.xlane.xlu1 %1349 }
 0x59a   : > { %v1200_v59 = vpack.c.bf16 %v1198_v55, %v1198_v55  ;;  %v1201_v60 = vpack.c.bf16 %v1199_v51, %v1199_v51  ;;  %1881 = vrcp.f32 %v1350_v61 }
 0x59c   : > { %v1369_v63 = vsel %vm1367_vm5, %v1200_v59, 0  ;;  %v1416_v1 = vsel %vm1367_vm5, %v1201_v60, 0 }
 0x59d   : > { %1798 = vmatpush3.bf16.msra.mxu1 %v1369_v63  ;;  %1804 = vmatpush3.bf16.msra.mxu0 %v1416_v1 }
 0x59e   : > { %1809 = vmatprep.subr.bf16.mxu1 %v1893_v4  ;;  %1815 = vmatprep.subr.bf16.mxu0 %v1893_v4 }
 0x5a0   : > { %1800 = vmatmul.mubr.msk.bf16.vlgmr.msra.gmra.mrb[4].mxu1 %vm1207_vm3, %v1362_v56 }
 0x5a1   : > { %1811 = vmatprep.mubr.msk.bf16.mxu1 %vm1894_vm1, %v1893_v4  ;;  %1810 = vmatpush3.bf16.msra.mxu1 %v1471_v9 }
 0x5a2   : > { %1821 = vmatprep.subr.bf16.mxu1 %v1893_v4 }
 0x5a4   : > { %v1882_v3 = vpop.eup %1881 }
 0x5a5   : > { %v1360_v6 = vmul.f32 %v1882_v3, %v2151_v15 }
 0x5b8   : > { %v1353_v2 = vpop.xlane.xlu0 %1352 }
 0x5b9   : > { %1883 = vrcp.f32 %v1353_v2 }
 0x5c3   : > { %v1884_v5 = vpop.eup %1883 }
 0x5c4   : > { %v1361_v7 = vmul.f32 %v1884_v5, %v1876_v21 }
 0x5c6   : > { %v1363_v8 = vpack.c.bf16 %v1361_v7, %v1360_v6 }
 0x5c8   : > { %1806 = vmatmul.mubr.msk.bf16.vlgmr.msra.gmra.mrb[8].mxu0 %vm1207_vm3, %v1363_v8 }
 0x5c9   : > { %1817 = vmatprep.mubr.msk.bf16.mxu0 %vm1894_vm1, %v1893_v4  ;;  %1816 = vmatpush3.bf16.msra.mxu0 %v1517_v11 }
 0x5ca   : > { %1827 = vmatprep.subr.bf16.mxu0 %v1893_v4 }
 0x673   : > { %v1405_v13 = vpop.f32.mrb[4].mxu1 }
 0x674   : > { %v1459_v15 = vpack.c.bf16 %v1405_v13, %v1405_v13  ;;  %v1801_v16 = vpop.f32.mrb[5].mxu1 }
 0x675   : > { %v1408_v18 = vpop.f32.mrb[6].mxu1 }
 0x676   : > { %v1460_v20 = vpack.c.bf16 %v1408_v18, %v1408_v18  ;;  %v1802_v21 = vpop.f32.mrb[7].mxu1  ;;  %1812 = vmatmul.mubr.msk.bf16.vlgmr.msra.gmra.mrb[8].mxu1 %vm1207_vm3, %v1459_v15 }
 0x677   : > { %1822 = vmatpush3.bf16.msra.mxu1 %v1563_v17  ;;  %1823 = vmatprep.mubr.msk.bf16.mxu1 %vm1894_vm1, %v1893_v4 }
 0x678   : > { %1818 = vmatmul.mubr.msk.bf16.vlgmr.msra.gmra.mrb[12].mxu0 %vm1207_vm3, %v1460_v20 }
 0x679   : > { %1828 = vmatpush3.bf16.msra.mxu0 %v1609_v22  ;;  %1829 = vmatprep.mubr.msk.bf16.mxu0 %vm1894_vm1, %v1893_v4 }
 0x69b   : > { %v1452_v23 = vpop.f32.mrb[8].mxu0 }
 0x69c   : > { %v1461_v24 = vpack.c.bf16 %v1452_v23, %v1452_v23  ;;  %v1807_v25 = vpop.f32.mrb[9].mxu0 }
 0x69d   : > { %v1455_v26 = vpop.f32.mrb[10].mxu0 }
 0x69e   : > { %v1462_v27 = vpack.c.bf16 %v1455_v26, %v1455_v26  ;;  %v1808_v28 = vpop.f32.mrb[11].mxu0  ;;  %1824 = vmatmul.mubr.msk.bf16.vlgmr.msra.gmra.mrb[12].mxu1 %vm1207_vm3, %v1461_v24 }
 0x6a0   : > { %1830 = vmatmul.mubr.msk.bf16.vlgmr.msra.gmra.mrb[16].mxu0 %vm1207_vm3, %v1462_v27 }
 0x749   : > { %v1507_v29 = vpop.f32.mrb[8].mxu1 }
 0x74a   : > { %v1813_v19 = vpop.f32.mrb[9].mxu1  ;;  %v1651_v32 = vsel %vm358_vm0, %v1507_v29, 0.0 }
 0x74b   : > { %v1510_v30 = vpop.f32.mrb[10].mxu1  ;;  %v1553_v31 = vpop.f32.mrb[12].mxu0 }
 0x74c   : > { %v1652_v33 = vsel %vm358_vm0, %v1553_v31, 0.0  ;;  %v1814_v34 = vpop.f32.mrb[11].mxu1  ;;  %v1819_v4 = vpop.f32.mrb[13].mxu0 }
 0x74d   : > { %v1653_v35 = vadd.f32 %v1652_v33, %v1651_v32  ;;  %v1556_v36 = vpop.f32.mrb[14].mxu0 }
 0x74e   : > { %v1820_v37 = vpop.f32.mrb[15].mxu0 }
 0x771   : > { %v1599_v38 = vpop.f32.mrb[12].mxu1 }
 0x772   : > { %v1654_v39 = vsel %vm358_vm0, %v1599_v38, 0.0  ;;  %v1825_v40 = vpop.f32.mrb[13].mxu1 }
 0x773   : > { %v1655_v41 = vadd.f32 %v1654_v39, %v1653_v35  ;;  %v1602_v42 = vpop.f32.mrb[14].mxu1  ;;  %v1645_v43 = vpop.f32.mrb[16].mxu0 }
 0x774   : > { %v1656_v44 = vsel %vm358_vm0, %v1645_v43, 0.0  ;;  %v1826_v45 = vpop.f32.mrb[15].mxu1  ;;  %v1831_v46 = vpop.f32.mrb[17].mxu0 }
 0x775   : > { %v1657_v48 = vadd.f32 %v1656_v44, %v1655_v41  ;;  %v1648_v49 = vpop.f32.mrb[18].mxu0 }
 0x776   : > { %v1832_v47 = vpop.f32.mrb[19].mxu0 }
 0x777   : > { %v1658_v52 = vadd.f32 %v1657_v48, %v1978_v0 }
 0x779   : > { %v1666_v54 = vadd.f32 %v1753_v50, %v1658_v52 }
 0x77b   : > { %1667 = vst.msk [vmem:[%s354_s23] sm:$0xff] %vm358_vm0, %v1666_v54 }
 0x77c PF: > { %s20_s13 = sadd.s32 1, %s1891_s13  }
 0x77d   : > { %p17_p4 = scmp.ge.s32.totalorder %s20_s13, 4  }
 0x77f   :  { %19 = sbr.rel (!%p17_p4) target bundleno = 1 (0x1), region = 90 }

</bundles_post_ra>
